<compile_context>
chip_gen: v6e
topology: v6e:2x2x1
jax: 0.10.0
libtpu: 0.0.40
codegen_flags: <defaults>
</compile_context>

<pallas_src>
import functools

import jax
import jax.numpy as jnp
import numpy as np
from jax.experimental import pallas as pl
from jax.experimental.pallas import tpu as pltpu

LANE = 128
EXPANSION = 4
_F32 = jnp.float32
_BF16 = jnp.bfloat16
_VMEM_LIMIT = 32 * 1024 * 1024  # explicit scoped-VMEM limit (safe on v5e/v6e/v7x)


# ---------------------------------------------------------------------------
# helpers
# ---------------------------------------------------------------------------

def _round_up(x, m):
    return (x + m - 1) // m * m


def _row_tile(m, target):
    """Largest multiple-of-8 divisor of m that is <= target (m itself if m <= target)."""
    if m <= target:
        return m
    t = max(8, target - (target % 8))
    for cand in range(t, 7, -8):
        if m % cand == 0:
            return cand
    return m  # fallback: single full block


def _pad_channels(x, c_to):
    c = x.shape[-1]
    if c == c_to:
        return x
    pad = [(0, 0)] * (x.ndim - 1) + [(0, c_to - c)]
    return jnp.pad(x, pad)


def _cparams(sem):
    return pltpu.CompilerParams(dimension_semantics=sem, vmem_limit_bytes=_VMEM_LIMIT)


# ---------------------------------------------------------------------------
# Pallas kernels
# ---------------------------------------------------------------------------

def _bn_relu_mm_bn_relu_kernel(x_ref, s1_ref, b1_ref, w_ref, s2_ref, b2_ref, o_ref):
    # prologue bn1+relu (f32) -> bf16 matmul (f32 acc) -> epilogue bn2+relu (f32) -> bf16 out
    a = jnp.maximum(x_ref[...] * s1_ref[...] + b1_ref[...], 0.0)
    y = jnp.dot(a.astype(_BF16), w_ref[...], preferred_element_type=jnp.float32)
    o_ref[...] = jnp.maximum(y * s2_ref[...] + b2_ref[...], 0.0).astype(o_ref.dtype)


def _bn_relu_mm_kernel(x_ref, s_ref, b_ref, w_ref, o_ref):
    # shortcut: prologue bn1+relu (f32) -> bf16 matmul -> f32 out
    a = jnp.maximum(x_ref[...] * s_ref[...] + b_ref[...], 0.0)
    o_ref[...] = jnp.dot(a.astype(_BF16), w_ref[...], preferred_element_type=jnp.float32)


def _conv3x3_tap_kernel(p_ref, w_ref, s3_ref, b3_ref, o_ref, acc_ref):
    # grid = (row_tiles [parallel], 9 taps [arbitrary]); f32 accumulator in VMEM scratch
    t = pl.program_id(1)

    @pl.when(t == 0)
    def _():
        acc_ref[...] = jnp.zeros_like(acc_ref)

    acc_ref[...] += jnp.dot(p_ref[0], w_ref[0], preferred_element_type=jnp.float32)

    @pl.when(t == pl.num_programs(1) - 1)
    def _():
        o_ref[...] = jnp.maximum(acc_ref[...] * s3_ref[...] + b3_ref[...],
                                 0.0).astype(o_ref.dtype)


def _mm_add_kernel(a_ref, w_ref, r_ref, o_ref):
    # final 1x1 conv (bf16 MXU, f32 acc) fused with residual add (f32)
    o_ref[...] = (jnp.dot(a_ref[...], w_ref[...], preferred_element_type=jnp.float32)
                  + r_ref[...])


# ---------------------------------------------------------------------------
# pallas_call wrappers (row-tiled grids, resident weights)
# ---------------------------------------------------------------------------

def bn_relu_matmul_bn_relu(x2d, s1, b1, w, s2, b2, *, row_tile):
    M, K = x2d.shape
    N = w.shape[1]
    tm = _row_tile(M, row_tile)
    cost = pl.CostEstimate(flops=2 * M * K * N, transcendentals=0,
                           bytes_accessed=M * K * 4 + K * N * 2 + M * N * 2 + 2 * (K + N) * 4)
    return pl.pallas_call(
        _bn_relu_mm_bn_relu_kernel,
        out_shape=jax.ShapeDtypeStruct((M, N), _BF16),
        grid=(M // tm,),
        in_specs=[pl.BlockSpec((tm, K), lambda i: (i, 0)),
                  pl.BlockSpec((1, K), lambda i: (0, 0)),
                  pl.BlockSpec((1, K), lambda i: (0, 0)),
                  pl.BlockSpec((K, N), lambda i: (0, 0)),
                  pl.BlockSpec((1, N), lambda i: (0, 0)),
                  pl.BlockSpec((1, N), lambda i: (0, 0))],
        out_specs=pl.BlockSpec((tm, N), lambda i: (i, 0)),
        compiler_params=_cparams(("parallel",)),
        cost_estimate=cost,
    )(x2d, s1, b1, w, s2, b2)


def bn_relu_matmul(x2d, s, b, w, *, row_tile):
    M, K = x2d.shape
    N = w.shape[1]
    tm = _row_tile(M, row_tile)
    cost = pl.CostEstimate(flops=2 * M * K * N, transcendentals=0,
                           bytes_accessed=M * K * 4 + K * N * 2 + M * N * 4 + 2 * K * 4)
    return pl.pallas_call(
        _bn_relu_mm_kernel,
        out_shape=jax.ShapeDtypeStruct((M, N), _F32),
        grid=(M // tm,),
        in_specs=[pl.BlockSpec((tm, K), lambda i: (i, 0)),
                  pl.BlockSpec((1, K), lambda i: (0, 0)),
                  pl.BlockSpec((1, K), lambda i: (0, 0)),
                  pl.BlockSpec((K, N), lambda i: (0, 0))],
        out_specs=pl.BlockSpec((tm, N), lambda i: (i, 0)),
        compiler_params=_cparams(("parallel",)),
        cost_estimate=cost,
    )(x2d, s, b, w)


def conv3x3_bn_relu(patches, w_taps, s3, b3, *, row_tile):
    T, M, K = patches.shape
    N = w_taps.shape[2]
    tm = _row_tile(M, row_tile)
    cost = pl.CostEstimate(flops=2 * T * M * K * N, transcendentals=0,
                           bytes_accessed=T * M * K * 2 + T * K * N * 2 + M * N * 2 + 2 * N * 4)
    return pl.pallas_call(
        _conv3x3_tap_kernel,
        out_shape=jax.ShapeDtypeStruct((M, N), _BF16),
        grid=(M // tm, T),
        in_specs=[pl.BlockSpec((1, tm, K), lambda i, t: (t, i, 0)),
                  pl.BlockSpec((1, K, N), lambda i, t: (t, 0, 0)),
                  pl.BlockSpec((1, N), lambda i, t: (0, 0)),
                  pl.BlockSpec((1, N), lambda i, t: (0, 0))],
        out_specs=pl.BlockSpec((tm, N), lambda i, t: (i, 0)),
        scratch_shapes=[pltpu.VMEM((tm, N), _F32)],
        compiler_params=_cparams(("parallel", "arbitrary")),
        cost_estimate=cost,
    )(patches, w_taps, s3, b3)


def matmul_add(a, w, res, *, row_tile):
    M, K = a.shape
    N = w.shape[1]
    tm = _row_tile(M, row_tile)
    cost = pl.CostEstimate(flops=2 * M * K * N, transcendentals=0,
                           bytes_accessed=M * K * 2 + K * N * 2 + 2 * M * N * 4)
    return pl.pallas_call(
        _mm_add_kernel,
        out_shape=jax.ShapeDtypeStruct((M, N), _F32),
        grid=(M // tm,),
        in_specs=[pl.BlockSpec((tm, K), lambda i: (i, 0)),
                  pl.BlockSpec((K, N), lambda i: (0, 0)),
                  pl.BlockSpec((tm, N), lambda i: (i, 0))],
        out_specs=pl.BlockSpec((tm, N), lambda i: (i, 0)),
        input_output_aliases={2: 0},  # write result in place of the shortcut buffer
        compiler_params=_cparams(("parallel",)),
        cost_estimate=cost,
    )(a, w, res)


# ---------------------------------------------------------------------------
# PreActBottleneck forward
# ---------------------------------------------------------------------------

def preact_bottleneck_forward_nhwc(x_nhwc, params, stride, row_tile_target=1024):
    """NHWC-native forward (channels already padded to LANE multiples in `params`)."""
    N, H, W, _ = x_nhwc.shape
    cin_p = params["w1"].shape[0]
    planes_p = params["w1"].shape[1]
    cout_p = params["w3"].shape[1]

    Ho = (H + 2 - 3) // stride + 1
    Wo = (W + 2 - 3) // stride + 1
    M = N * H * W
    M2 = N * Ho * Wo

    x_p = _pad_channels(x_nhwc, cin_p)             # zero lanes are killed by zero weight rows
    x2d = x_p.reshape(M, cin_p)

    # K1: o1 = relu(bn2(conv1(relu(bn1(x)))))  (full resolution, bf16 out)
    o1 = bn_relu_matmul_bn_relu(x2d,
                                params["bn1_scale"], params["bn1_bias"], params["w1"],
                                params["bn2_scale"], params["bn2_bias"],
                                row_tile=row_tile_target)

    # shortcut path
    if "wsc" in params:
        xs = x_p[:, ::stride, ::stride, :].reshape(M2, cin_p)
        shortcut = bn_relu_matmul(xs, params["bn1_scale"], params["bn1_bias"],
                                  params["wsc"], row_tile=row_tile_target)
    else:
        shortcut = x2d                             # identity: stride==1 and cin_p==cout_p

    # conv2: 3x3 stride conv, pad=1 -- spatial zero-padding is applied to the already
    # activated o1, so zeros stay zeros (bn2+relu was fused upstream).
    o1_nhwc = o1.reshape(N, H, W, planes_p)
    opad = jnp.pad(o1_nhwc, ((0, 0), (1, 1), (1, 1), (0, 0)))
    taps = []
    for ky in range(3):
        for kx in range(3):
            p = opad[:, ky: ky + (Ho - 1) * stride + 1: stride,
                        kx: kx + (Wo - 1) * stride + 1: stride, :]
            taps.append(p.reshape(M2, planes_p))
    patches = jnp.stack(taps, axis=0)              # (9, M2, planes_p) bf16

    a3 = conv3x3_bn_relu(patches, params["w2"],
                         params["bn3_scale"], params["bn3_bias"],
                         row_tile=row_tile_target)

    # K3: conv3 (1x1) + residual add
    out = matmul_add(a3, params["w3"], shortcut, row_tile=row_tile_target)  # (M2, cout_p) f32
    return out.reshape(N, Ho, Wo, cout_p)


@functools.partial(jax.jit, static_argnames=("stride", "cout", "row_tile_target"))
def preact_bottleneck_forward(x_nchw, params, *, stride, cout, row_tile_target=1024):
    """NCHW-facing wrapper (layout conversion done once at the block boundary; a full
    network should use the NHWC entry point directly and convert once per model)."""
    x_nhwc = jnp.transpose(x_nchw, (0, 2, 3, 1))
    out = preact_bottleneck_forward_nhwc(x_nhwc, params, stride, row_tile_target)
    return jnp.transpose(out[..., :cout], (0, 3, 1, 2))


# ---------------------------------------------------------------------------
# Deterministic parameters + pure-JAX reference for validation
# ---------------------------------------------------------------------------

def make_params(key, in_planes, planes, stride):
    cout = EXPANSION * planes
    ks = jax.random.split(key, 8)

    def bn_raw(k, c):
        k1, k2, k3, k4 = jax.random.split(k, 4)
        return dict(gamma=jax.random.uniform(k1, (c,), _F32, 0.5, 1.5),
                    beta=0.1 * jax.random.normal(k2, (c,), _F32),
                    mean=0.1 * jax.random.normal(k3, (c,), _F32),
                    var=jax.random.uniform(k4, (c,), _F32, 0.5, 1.5))

    raw = {
        "bn1": bn_raw(ks[0], in_planes),
        "bn2": bn_raw(ks[1], planes),
        "bn3": bn_raw(ks[2], planes),
        "w1_oihw": 0.1 * jax.random.normal(ks[3], (planes, in_planes, 1, 1), _F32),
        "w2_oihw": 0.1 * jax.random.normal(ks[4], (planes, planes, 3, 3), _F32),
        "w3_oihw": 0.1 * jax.random.normal(ks[5], (cout, planes, 1, 1), _F32),
    }
    if stride != 1 or in_planes != cout:
        raw["wsc_oihw"] = 0.1 * jax.random.normal(ks[6], (cout, in_planes, 1, 1), _F32)

    cin_p = _round_up(in_planes, LANE)
    p_p = _round_up(planes, LANE)
    cout_p = _round_up(cout, LANE)

    def bn_scale_bias(bn, c_p, eps=1e-5):
        scale = bn["gamma"] / jnp.sqrt(bn["var"] + eps)
        bias = bn["beta"] - bn["mean"] * scale
        return (_pad_channels(scale.reshape(1, -1), c_p).astype(_F32),
                _pad_channels(bias.reshape(1, -1), c_p).astype(_F32))

    def pad_w(w2d, rows, cols):
        return (jnp.zeros((rows, cols), _F32)
                .at[:w2d.shape[0], :w2d.shape[1]].set(w2d).astype(_BF16))

    params = {}
    params["bn1_scale"], params["bn1_bias"] = bn_scale_bias(raw["bn1"], cin_p)
    params["bn2_scale"], params["bn2_bias"] = bn_scale_bias(raw["bn2"], p_p)
    params["bn3_scale"], params["bn3_bias"] = bn_scale_bias(raw["bn3"], p_p)
    params["w1"] = pad_w(raw["w1_oihw"][:, :, 0, 0].T, cin_p, p_p)
    w2 = raw["w2_oihw"].transpose(2, 3, 1, 0).reshape(9, planes, planes)
    params["w2"] = (jnp.zeros((9, p_p, p_p), _F32)
                    .at[:, :planes, :planes].set(w2).astype(_BF16))
    params["w3"] = pad_w(raw["w3_oihw"][:, :, 0, 0].T, p_p, cout_p)
    if "wsc_oihw" in raw:
        params["wsc"] = pad_w(raw["wsc_oihw"][:, :, 0, 0].T, cin_p, cout_p)

    meta = dict(in_planes=in_planes, planes=planes, cout=cout)
    return raw, params, meta


def reference_forward(x, raw, stride):
    def conv(x, w, s, pad):
        return jax.lax.conv_general_dilated(
            x, w, (s, s), pad, dimension_numbers=("NCHW", "OIHW", "NCHW"))

    def bn(x, p, eps=1e-5):
        r = lambda v: v.reshape(1, -1, 1, 1)
        return (x - r(p["mean"])) / jnp.sqrt(r(p["var"]) + eps) * r(p["gamma"]) + r(p["beta"])

    a = jax.nn.relu(bn(x, raw["bn1"]))
    if "wsc_oihw" in raw:
        shortcut = conv(a, raw["wsc_oihw"], stride, "VALID")
    else:
        shortcut = x
    o = conv(a, raw["w1_oihw"], 1, "VALID")
    o = conv(jax.nn.relu(bn(o, raw["bn2"])), raw["w2_oihw"], stride, ((1, 1), (1, 1)))
    o = conv(jax.nn.relu(bn(o, raw["bn3"])), raw["w3_oihw"], 1, "VALID")
    return o + shortcut


if __name__ == "__main__":
    key = jax.random.PRNGKey(0)
    configs = [
        # (N, in_planes, planes, stride, H, W)
        (2, 4, 4, 2, 16, 16),    # projection shortcut, strided
        (2, 16, 4, 1, 16, 16),   # identity shortcut (in_planes == 4*planes, stride 1)
    ]
    for (n, in_planes, planes, stride, h, w) in configs:
        key, kx, kp = jax.random.split(key, 3)
        x = jax.random.normal(kx, (n, in_planes, h, w), _F32)
        raw, params, meta = make_params(kp, in_planes, planes, stride)

        # small row-tile target so the toy shapes exercise multi-tile grids and the
        # tap-reduction accumulator reset; real networks should use the 512-2048 default.
        out = preact_bottleneck_forward(x, params, stride=stride, cout=meta["cout"],
                                        row_tile_target=256)
        out = jax.block_until_ready(out)

        ref = jax.block_until_ready(reference_forward(x, raw, stride))
        assert out.shape == ref.shape, (out.shape, ref.shape)
        np.testing.assert_allclose(np.asarray(out), np.asarray(ref), rtol=2e-2, atol=2e-2)

    print("KERNEL_OK")
</pallas_src>

<mosaic_0001>
module attributes {stable_mosaic.version = 11 : i64} {
  func.func @_bn_relu_mm_bn_relu_kernel(%arg0: i32, %arg1: memref<256x128xf32, #tpu.memory_space<vmem>>, %arg2: memref<1x128xf32, #tpu.memory_space<vmem>>, %arg3: memref<1x128xf32, #tpu.memory_space<vmem>>, %arg4: memref<128x128xbf16, #tpu.memory_space<vmem>>, %arg5: memref<1x128xf32, #tpu.memory_space<vmem>>, %arg6: memref<1x128xf32, #tpu.memory_space<vmem>>, %arg7: memref<256x128xbf16, #tpu.memory_space<vmem>>) attributes {dimension_semantics = [#tpu.dimension_semantics<parallel>], iteration_bounds = array<i64: 2>, scalar_prefetch = 0 : i64, scratch_operands = 0 : i64, tpu.core_type = #tpu.core_type<tc>, window_params = [{transform_indices = @transform_0, window_bounds = array<i64: 256, 128>}, {pipeline_mode = #tpu.pipeline_mode<synchronous>, transform_indices = @transform_1, window_bounds = array<i64: 1, 128>}, {pipeline_mode = #tpu.pipeline_mode<synchronous>, transform_indices = @transform_2, window_bounds = array<i64: 1, 128>}, {pipeline_mode = #tpu.pipeline_mode<synchronous>, transform_indices = @transform_3, window_bounds = array<i64: 128, 128>}, {pipeline_mode = #tpu.pipeline_mode<synchronous>, transform_indices = @transform_4, window_bounds = array<i64: 1, 128>}, {pipeline_mode = #tpu.pipeline_mode<synchronous>, transform_indices = @transform_5, window_bounds = array<i64: 1, 128>}, {transform_indices = @transform_6, window_bounds = array<i64: 256, 128>}]} {
    %c0 = arith.constant 0 : index
    %c0_0 = arith.constant 0 : index
    %0 = vector.load %arg1[%c0, %c0_0] : memref<256x128xf32, #tpu.memory_space<vmem>>, vector<256x128xf32>
    %c0_1 = arith.constant 0 : index
    %c0_2 = arith.constant 0 : index
    %1 = vector.load %arg2[%c0_1, %c0_2] : memref<1x128xf32, #tpu.memory_space<vmem>>, vector<1x128xf32>
    %2 = vector.broadcast %1 : vector<1x128xf32> to vector<256x128xf32>
    %3 = arith.mulf %0, %2 : vector<256x128xf32>
    %c0_3 = arith.constant 0 : index
    %c0_4 = arith.constant 0 : index
    %4 = vector.load %arg3[%c0_3, %c0_4] : memref<1x128xf32, #tpu.memory_space<vmem>>, vector<1x128xf32>
    %5 = vector.broadcast %4 : vector<1x128xf32> to vector<256x128xf32>
    %6 = arith.addf %3, %5 : vector<256x128xf32>
    %cst = arith.constant 0.000000e+00 : f32
    %7 = vector.broadcast %cst : f32 to vector<256x128xf32>
    %8 = arith.maximumf %6, %7 : vector<256x128xf32>
    %9 = arith.truncf %8 : vector<256x128xf32> to vector<256x128xbf16>
    %c0_5 = arith.constant 0 : index
    %c0_6 = arith.constant 0 : index
    %10 = vector.load %arg4[%c0_5, %c0_6] : memref<128x128xbf16, #tpu.memory_space<vmem>>, vector<128x128xbf16>
    %cst_7 = arith.constant dense<0.000000e+00> : vector<256x128xf32>
    %11 = tpu.matmul %9, %10, %cst_7 {dimension_numbers = #tpu.dot_dimension_numbers<[1], [0], [0], [1], [0, 0, 1, 1], [], []>} : vector<256x128xbf16>, vector<128x128xbf16>, vector<256x128xf32> -> vector<256x128xf32>
    %c0_8 = arith.constant 0 : index
    %c0_9 = arith.constant 0 : index
    %12 = vector.load %arg5[%c0_8, %c0_9] : memref<1x128xf32, #tpu.memory_space<vmem>>, vector<1x128xf32>
    %13 = vector.broadcast %12 : vector<1x128xf32> to vector<256x128xf32>
    %14 = arith.mulf %11, %13 : vector<256x128xf32>
    %c0_10 = arith.constant 0 : index
    %c0_11 = arith.constant 0 : index
    %15 = vector.load %arg6[%c0_10, %c0_11] : memref<1x128xf32, #tpu.memory_space<vmem>>, vector<1x128xf32>
    %16 = vector.broadcast %15 : vector<1x128xf32> to vector<256x128xf32>
    %17 = arith.addf %14, %16 : vector<256x128xf32>
    %cst_12 = arith.constant 0.000000e+00 : f32
    %18 = vector.broadcast %cst_12 : f32 to vector<256x128xf32>
    %19 = arith.maximumf %17, %18 : vector<256x128xf32>
    %20 = arith.truncf %19 : vector<256x128xf32> to vector<256x128xbf16>
    %c0_13 = arith.constant 0 : index
    %c0_14 = arith.constant 0 : index
    %21 = vector.load %arg7[%c0_13, %c0_14] : memref<256x128xbf16, #tpu.memory_space<vmem>>, vector<256x128xbf16>
    tpu.vector_store %arg7[%c0_13, %c0_14], %20 {strides = array<i32>} : memref<256x128xbf16, #tpu.memory_space<vmem>>, vector<256x128xbf16>,
    return
  }
  func.func @transform_0(%arg0: i32) -> (i32, i32) {
    %c0_i32 = arith.constant 0 : i32
    %c0_i32_0 = arith.constant 0 : i32
    return %arg0, %c0_i32 : i32, i32
  }
  func.func @transform_1(%arg0: i32) -> (i32, i32) {
    %c0_i32 = arith.constant 0 : i32
    %c0_i32_0 = arith.constant 0 : i32
    %c0_i32_1 = arith.constant 0 : i32
    return %c0_i32, %c0_i32_0 : i32, i32
  }
  func.func @transform_2(%arg0: i32) -> (i32, i32) {
    %c0_i32 = arith.constant 0 : i32
    %c0_i32_0 = arith.constant 0 : i32
    %c0_i32_1 = arith.constant 0 : i32
    return %c0_i32, %c0_i32_0 : i32, i32
  }
  func.func @transform_3(%arg0: i32) -> (i32, i32) {
    %c0_i32 = arith.constant 0 : i32
    %c0_i32_0 = arith.constant 0 : i32
    %c0_i32_1 = arith.constant 0 : i32
    return %c0_i32, %c0_i32_0 : i32, i32
  }
  func.func @transform_4(%arg0: i32) -> (i32, i32) {
    %c0_i32 = arith.constant 0 : i32
    %c0_i32_0 = arith.constant 0 : i32
    %c0_i32_1 = arith.constant 0 : i32
    return %c0_i32, %c0_i32_0 : i32, i32
  }
  func.func @transform_5(%arg0: i32) -> (i32, i32) {
    %c0_i32 = arith.constant 0 : i32
    %c0_i32_0 = arith.constant 0 : i32
    %c0_i32_1 = arith.constant 0 : i32
    return %c0_i32, %c0_i32_0 : i32, i32
  }
  func.func @transform_6(%arg0: i32) -> (i32, i32) {
    %c0_i32 = arith.constant 0 : i32
    %c0_i32_0 = arith.constant 0 : i32
    return %arg0, %c0_i32 : i32, i32
  }
}

module attributes {stable_mosaic.version = 11 : i64} {
  func.func @_conv3x3_tap_kernel(%arg0: i32, %arg1: i32, %arg2: memref<1x128x128xbf16, #tpu.memory_space<vmem>>, %arg3: memref<1x128x128xbf16, #tpu.memory_space<vmem>>, %arg4: memref<1x128xf32, #tpu.memory_space<vmem>>, %arg5: memref<1x128xf32, #tpu.memory_space<vmem>>, %arg6: memref<128x128xbf16, #tpu.memory_space<vmem>>, %arg7: memref<128x128xf32, #tpu.memory_space<vmem>>) attributes {dimension_semantics = [#tpu.dimension_semantics<parallel>, #tpu.dimension_semantics<arbitrary>], iteration_bounds = array<i64: 1, 9>, scalar_prefetch = 0 : i64, scratch_operands = 1 : i64, tpu.core_type = #tpu.core_type<tc>, window_params = [{transform_indices = @transform_0, window_bounds = array<i64: 1, 128, 128>}, {transform_indices = @transform_1, window_bounds = array<i64: 1, 128, 128>}, {pipeline_mode = #tpu.pipeline_mode<synchronous>, transform_indices = @transform_2, window_bounds = array<i64: 1, 128>}, {pipeline_mode = #tpu.pipeline_mode<synchronous>, transform_indices = @transform_3, window_bounds = array<i64: 1, 128>}, {transform_indices = @transform_4, window_bounds = array<i64: 128, 128>}]} {
    %c0_i32 = arith.constant 0 : i32
    %0 = arith.cmpi eq, %arg1, %c0_i32 : i32
    %1 = arith.extui %0 : i1 to i32
    %c0_i32_0 = arith.constant 0 : i32
    %2 = arith.cmpi ne, %1, %c0_i32_0 : i32
    scf.if %2 {
      %cst_11 = arith.constant 0.000000e+00 : f32
      %14 = vector.broadcast %cst_11 : f32 to vector<128x128xf32>
      %c0_12 = arith.constant 0 : index
      %c0_13 = arith.constant 0 : index
      %15 = vector.load %arg7[%c0_12, %c0_13] : memref<128x128xf32, #tpu.memory_space<vmem>>, vector<128x128xf32>
      tpu.vector_store %arg7[%c0_12, %c0_13], %14 {strides = array<i32>} : memref<128x128xf32, #tpu.memory_space<vmem>>, vector<128x128xf32>,
    } else {
    }
    %c0 = arith.constant 0 : index
    %c0_1 = arith.constant 0 : index
    %3 = vector.load %arg7[%c0, %c0_1] : memref<128x128xf32, #tpu.memory_space<vmem>>, vector<128x128xf32>
    %c0_2 = arith.constant 0 : index
    %c0_3 = arith.constant 0 : index
    %c0_4 = arith.constant 0 : index
    %4 = vector.load %arg2[%c0_2, %c0_3, %c0_4] : memref<1x128x128xbf16, #tpu.memory_space<vmem>>, vector<1x128x128xbf16>
    %5 = vector.shape_cast %4 : vector<1x128x128xbf16> to vector<128x128xbf16>
    %c0_5 = arith.constant 0 : index
    %c0_6 = arith.constant 0 : index
    %c0_7 = arith.constant 0 : index
    %6 = vector.load %arg3[%c0_5, %c0_6, %c0_7] : memref<1x128x128xbf16, #tpu.memory_space<vmem>>, vector<1x128x128xbf16>
    %7 = vector.shape_cast %6 : vector<1x128x128xbf16> to vector<128x128xbf16>
    %cst = arith.constant dense<0.000000e+00> : vector<128x128xf32>
    %8 = tpu.matmul %5, %7, %cst {dimension_numbers = #tpu.dot_dimension_numbers<[1], [0], [0], [1], [0, 0, 1, 1], [], []>} : vector<128x128xbf16>, vector<128x128xbf16>, vector<128x128xf32> -> vector<128x128xf32>
    %9 = arith.addf %3, %8 : vector<128x128xf32>
    %c0_8 = arith.constant 0 : index
    %c0_9 = arith.constant 0 : index
    %10 = vector.load %arg7[%c0_8, %c0_9] : memref<128x128xf32, #tpu.memory_space<vmem>>, vector<128x128xf32>
    tpu.vector_store %arg7[%c0_8, %c0_9], %9 {strides = array<i32>} : memref<128x128xf32, #tpu.memory_space<vmem>>, vector<128x128xf32>,
    %c8_i32 = arith.constant 8 : i32
    %11 = arith.cmpi eq, %arg1, %c8_i32 : i32
    %12 = arith.extui %11 : i1 to i32
    %c0_i32_10 = arith.constant 0 : i32
    %13 = arith.cmpi ne, %12, %c0_i32_10 : i32
    scf.if %13 {
      %c0_11 = arith.constant 0 : index
      %c0_12 = arith.constant 0 : index
      %14 = vector.load %arg7[%c0_11, %c0_12] : memref<128x128xf32, #tpu.memory_space<vmem>>, vector<128x128xf32>
      %c0_13 = arith.constant 0 : index
      %c0_14 = arith.constant 0 : index
      %15 = vector.load %arg4[%c0_13, %c0_14] : memref<1x128xf32, #tpu.memory_space<vmem>>, vector<1x128xf32>
      %16 = vector.broadcast %15 : vector<1x128xf32> to vector<128x128xf32>
      %17 = arith.mulf %14, %16 : vector<128x128xf32>
      %c0_15 = arith.constant 0 : index
      %c0_16 = arith.constant 0 : index
      %18 = vector.load %arg5[%c0_15, %c0_16] : memref<1x128xf32, #tpu.memory_space<vmem>>, vector<1x128xf32>
      %19 = vector.broadcast %18 : vector<1x128xf32> to vector<128x128xf32>
      %20 = arith.addf %17, %19 : vector<128x128xf32>
      %cst_17 = arith.constant 0.000000e+00 : f32
      %21 = vector.broadcast %cst_17 : f32 to vector<128x128xf32>
      %22 = arith.maximumf %20, %21 : vector<128x128xf32>
      %23 = arith.truncf %22 : vector<128x128xf32> to vector<128x128xbf16>
      %c0_18 = arith.constant 0 : index
      %c0_19 = arith.constant 0 : index
      %24 = vector.load %arg6[%c0_18, %c0_19] : memref<128x128xbf16, #tpu.memory_space<vmem>>, vector<128x128xbf16>
      tpu.vector_store %arg6[%c0_18, %c0_19], %23 {strides = array<i32>} : memref<128x128xbf16, #tpu.memory_space<vmem>>, vector<128x128xbf16>,
    } else {
    }
    return
  }
  func.func @transform_0(%arg0: i32, %arg1: i32) -> (i32, i32, i32) {
    %c0_i32 = arith.constant 0 : i32
    %c0_i32_0 = arith.constant 0 : i32
    return %arg1, %arg0, %c0_i32 : i32, i32, i32
  }
  func.func @transform_1(%arg0: i32, %arg1: i32) -> (i32, i32, i32) {
    %c0_i32 = arith.constant 0 : i32
    %c0_i32_0 = arith.constant 0 : i32
    %c0_i32_1 = arith.constant 0 : i32
    return %arg1, %c0_i32, %c0_i32_0 : i32, i32, i32
  }
  func.func @transform_2(%arg0: i32, %arg1: i32) -> (i32, i32) {
    %c0_i32 = arith.constant 0 : i32
    %c0_i32_0 = arith.constant 0 : i32
    %c0_i32_1 = arith.constant 0 : i32
    return %c0_i32, %c0_i32_0 : i32, i32
  }
  func.func @transform_3(%arg0: i32, %arg1: i32) -> (i32, i32) {
    %c0_i32 = arith.constant 0 : i32
    %c0_i32_0 = arith.constant 0 : i32
    %c0_i32_1 = arith.constant 0 : i32
    return %c0_i32, %c0_i32_0 : i32, i32
  }
  func.func @transform_4(%arg0: i32, %arg1: i32) -> (i32, i32) {
    %c0_i32 = arith.constant 0 : i32
    %c0_i32_0 = arith.constant 0 : i32
    return %arg0, %c0_i32 : i32, i32
  }
}

module attributes {stable_mosaic.version = 11 : i64} {
  func.func @_bn_relu_mm_kernel(%arg0: i32, %arg1: memref<128x128xf32, #tpu.memory_space<vmem>>, %arg2: memref<1x128xf32, #tpu.memory_space<vmem>>, %arg3: memref<1x128xf32, #tpu.memory_space<vmem>>, %arg4: memref<128x128xbf16, #tpu.memory_space<vmem>>, %arg5: memref<128x128xf32, #tpu.memory_space<vmem>>) attributes {dimension_semantics = [#tpu.dimension_semantics<parallel>], iteration_bounds = array<i64: 1>, scalar_prefetch = 0 : i64, scratch_operands = 0 : i64, tpu.core_type = #tpu.core_type<tc>, window_params = [{transform_indices = @transform_0, window_bounds = array<i64: 128, 128>}, {pipeline_mode = #tpu.pipeline_mode<synchronous>, transform_indices = @transform_1, window_bounds = array<i64: 1, 128>}, {pipeline_mode = #tpu.pipeline_mode<synchronous>, transform_indices = @transform_2, window_bounds = array<i64: 1, 128>}, {pipeline_mode = #tpu.pipeline_mode<synchronous>, transform_indices = @transform_3, window_bounds = array<i64: 128, 128>}, {transform_indices = @transform_4, window_bounds = array<i64: 128, 128>}]} {
    %c0 = arith.constant 0 : index
    %c0_0 = arith.constant 0 : index
    %0 = vector.load %arg1[%c0, %c0_0] : memref<128x128xf32, #tpu.memory_space<vmem>>, vector<128x128xf32>
    %c0_1 = arith.constant 0 : index
    %c0_2 = arith.constant 0 : index
    %1 = vector.load %arg2[%c0_1, %c0_2] : memref<1x128xf32, #tpu.memory_space<vmem>>, vector<1x128xf32>
    %2 = vector.broadcast %1 : vector<1x128xf32> to vector<128x128xf32>
    %3 = arith.mulf %0, %2 : vector<128x128xf32>
    %c0_3 = arith.constant 0 : index
    %c0_4 = arith.constant 0 : index
    %4 = vector.load %arg3[%c0_3, %c0_4] : memref<1x128xf32, #tpu.memory_space<vmem>>, vector<1x128xf32>
    %5 = vector.broadcast %4 : vector<1x128xf32> to vector<128x128xf32>
    %6 = arith.addf %3, %5 : vector<128x128xf32>
    %cst = arith.constant 0.000000e+00 : f32
    %7 = vector.broadcast %cst : f32 to vector<128x128xf32>
    %8 = arith.maximumf %6, %7 : vector<128x128xf32>
    %9 = arith.truncf %8 : vector<128x128xf32> to vector<128x128xbf16>
    %c0_5 = arith.constant 0 : index
    %c0_6 = arith.constant 0 : index
    %10 = vector.load %arg4[%c0_5, %c0_6] : memref<128x128xbf16, #tpu.memory_space<vmem>>, vector<128x128xbf16>
    %cst_7 = arith.constant dense<0.000000e+00> : vector<128x128xf32>
    %11 = tpu.matmul %9, %10, %cst_7 {dimension_numbers = #tpu.dot_dimension_numbers<[1], [0], [0], [1], [0, 0, 1, 1], [], []>} : vector<128x128xbf16>, vector<128x128xbf16>, vector<128x128xf32> -> vector<128x128xf32>
    %c0_8 = arith.constant 0 : index
    %c0_9 = arith.constant 0 : index
    %12 = vector.load %arg5[%c0_8, %c0_9] : memref<128x128xf32, #tpu.memory_space<vmem>>, vector<128x128xf32>
    tpu.vector_store %arg5[%c0_8, %c0_9], %11 {strides = array<i32>} : memref<128x128xf32, #tpu.memory_space<vmem>>, vector<128x128xf32>,
    return
  }
  func.func @transform_0(%arg0: i32) -> (i32, i32) {
    %c0_i32 = arith.constant 0 : i32
    %c0_i32_0 = arith.constant 0 : i32
    return %arg0, %c0_i32 : i32, i32
  }
  func.func @transform_1(%arg0: i32) -> (i32, i32) {
    %c0_i32 = arith.constant 0 : i32
    %c0_i32_0 = arith.constant 0 : i32
    %c0_i32_1 = arith.constant 0 : i32
    return %c0_i32, %c0_i32_0 : i32, i32
  }
  func.func @transform_2(%arg0: i32) -> (i32, i32) {
    %c0_i32 = arith.constant 0 : i32
    %c0_i32_0 = arith.constant 0 : i32
    %c0_i32_1 = arith.constant 0 : i32
    return %c0_i32, %c0_i32_0 : i32, i32
  }
  func.func @transform_3(%arg0: i32) -> (i32, i32) {
    %c0_i32 = arith.constant 0 : i32
    %c0_i32_0 = arith.constant 0 : i32
    %c0_i32_1 = arith.constant 0 : i32
    return %c0_i32, %c0_i32_0 : i32, i32
  }
  func.func @transform_4(%arg0: i32) -> (i32, i32) {
    %c0_i32 = arith.constant 0 : i32
    %c0_i32_0 = arith.constant 0 : i32
    return %arg0, %c0_i32 : i32, i32
  }
}

module attributes {stable_mosaic.version = 11 : i64} {
  func.func @_mm_add_kernel(%arg0: i32, %arg1: memref<128x128xbf16, #tpu.memory_space<vmem>>, %arg2: memref<128x128xbf16, #tpu.memory_space<vmem>>, %arg3: memref<128x128xf32, #tpu.memory_space<vmem>>, %arg4: memref<128x128xf32, #tpu.memory_space<vmem>>) attributes {dimension_semantics = [#tpu.dimension_semantics<parallel>], iteration_bounds = array<i64: 1>, scalar_prefetch = 0 : i64, scratch_operands = 0 : i64, tpu.core_type = #tpu.core_type<tc>, window_params = [{transform_indices = @transform_0, window_bounds = array<i64: 128, 128>}, {pipeline_mode = #tpu.pipeline_mode<synchronous>, transform_indices = @transform_1, window_bounds = array<i64: 128, 128>}, {transform_indices = @transform_2, window_bounds = array<i64: 128, 128>}, {transform_indices = @transform_3, window_bounds = array<i64: 128, 128>}]} {
    %c0 = arith.constant 0 : index
    %c0_0 = arith.constant 0 : index
    %0 = vector.load %arg1[%c0, %c0_0] : memref<128x128xbf16, #tpu.memory_space<vmem>>, vector<128x128xbf16>
    %c0_1 = arith.constant 0 : index
    %c0_2 = arith.constant 0 : index
    %1 = vector.load %arg2[%c0_1, %c0_2] : memref<128x128xbf16, #tpu.memory_space<vmem>>, vector<128x128xbf16>
    %cst = arith.constant dense<0.000000e+00> : vector<128x128xf32>
    %2 = tpu.matmul %0, %1, %cst {dimension_numbers = #tpu.dot_dimension_numbers<[1], [0], [0], [1], [0, 0, 1, 1], [], []>} : vector<128x128xbf16>, vector<128x128xbf16>, vector<128x128xf32> -> vector<128x128xf32>
    %c0_3 = arith.constant 0 : index
    %c0_4 = arith.constant 0 : index
    %3 = vector.load %arg3[%c0_3, %c0_4] : memref<128x128xf32, #tpu.memory_space<vmem>>, vector<128x128xf32>
    %4 = arith.addf %2, %3 : vector<128x128xf32>
    %c0_5 = arith.constant 0 : index
    %c0_6 = arith.constant 0 : index
    %5 = vector.load %arg4[%c0_5, %c0_6] : memref<128x128xf32, #tpu.memory_space<vmem>>, vector<128x128xf32>
    tpu.vector_store %arg4[%c0_5, %c0_6], %4 {strides = array<i32>} : memref<128x128xf32, #tpu.memory_space<vmem>>, vector<128x128xf32>,
    return
  }
  func.func @transform_0(%arg0: i32) -> (i32, i32) {
    %c0_i32 = arith.constant 0 : i32
    %c0_i32_0 = arith.constant 0 : i32
    return %arg0, %c0_i32 : i32, i32
  }
  func.func @transform_1(%arg0: i32) -> (i32, i32) {
    %c0_i32 = arith.constant 0 : i32
    %c0_i32_0 = arith.constant 0 : i32
    %c0_i32_1 = arith.constant 0 : i32
    return %c0_i32, %c0_i32_0 : i32, i32
  }
  func.func @transform_2(%arg0: i32) -> (i32, i32) {
    %c0_i32 = arith.constant 0 : i32
    %c0_i32_0 = arith.constant 0 : i32
    return %arg0, %c0_i32 : i32, i32
  }
  func.func @transform_3(%arg0: i32) -> (i32, i32) {
    %c0_i32 = arith.constant 0 : i32
    %c0_i32_0 = arith.constant 0 : i32
    return %arg0, %c0_i32 : i32, i32
  }
}

</mosaic_0001>

<bundles_post_ra>
// kernel: preact_bottleneck_forward.4
= control target key start
LH: loop header
LB: loop body
LE: loop exit
PB: predicated region body
PF: predicated region fallthrough
CT: control target
= control target key end

     0   :  { %s1294_s21 = smov 0   ;;  %s1539_s0 = inlined_call_operand.vmem [shape: f32[512,128], index: 0, kind: input, shape index: {}]   ;;  %s1540_s1 = inlined_call_operand.vmem [shape: f32[1,128], index: 1, kind: input, shape index: {}]   ;;  %s1541_s2 = inlined_call_operand.vmem [shape: f32[1,128], index: 2, kind: input, shape index: {}]   ;;  %s1542_s3 = inlined_call_operand.vmem [shape: bf16[128,128], index: 3, kind: input, shape index: {}]   ;;  %s1543_s4 = inlined_call_operand.vmem [shape: f32[1,128], index: 4, kind: input, shape index: {}]   ;;  %s1544_s5 = inlined_call_operand.vmem [shape: f32[1,128], index: 5, kind: input, shape index: {}]   ;;  %s1545_s6 = inlined_call_operand.vmem [shape: bf16[512,128], index: 6, kind: output, shape index: {}]  }
   0x1 LB: > { %s965_s22 = sadd.s32 4294967295, %s1257_s21   ;;  %p969_p0 = scmp.ge.s32.totalorder %s1257_s21, 1  ;;  %s1257_s21 = sphi %s1294_s21, %s16_s21  }
   0x2   : > { %p213_p1 = scmp.lt.s32.totalorder %s1257_s21, 3 }
   0x4   : > { %p214_p2 = pnand %p969_p0, %p213_p1 }
   0x5   : > { %s970_s25 = sshll.u32 (!%p214_p2), %s965_s22, 5 }
   0x6   : > { %217 = sbr.rel (%p214_p2) target bundleno = 276 (0x114), region = 44  ;;  %p244_p3 = scmp.lt.s32.totalorder (!%p214_p2), %s970_s25, 63 }
   0xb   : > { %v1243_v0 = vld [vmem:[%s1542_s3 + $0x38] sm:$0xff]   ;;  %v1244_v1 = vld [vmem:[%s1542_s3 + $0x30] sm:$0xff]   ;;  %s1547_s25 = smov (!%p244_p3, %s970_s25), 63  ;;  %v1245_v2 = vld [vmem:[%s1542_s3 + $0x28] sm:$0xff]  }
   0xc   : > { %1171 = vmatprep.subr.bf16.mxu0 %v1243_v0  ;;  %1219 = vmatprep.subr.bf16.mxu1 %v1243_v0  ;;  %s971_s30 = sshll.u32 %s1547_s25, 3  ;;  %v1246_v3 = vld [vmem:[%s1542_s3 + $0x20] sm:$0xff]   ;;  %v1247_v16 = vld [vmem:[%s1542_s3 + $0x18] sm:$0xff]   ;;  %v1248_v30 = vld [vmem:[%s1542_s3 + $0x10] sm:$0xff]  }
   0xd   : > { %1172 = vmatpush3.bf16.msra.mxu0 %v1243_v0  ;;  %1227 = vmatpush3.bf16.msra.mxu1 %v1243_v0  ;;  %s1317_s9 = scalar_lea.vmem %s1539_s0, %s971_s30  ;;  %v1327_v6 = vld [vmem:[%s1540_s1] ss:$0 sm:$0xff]  ;;  %v1249_v42 = vld [vmem:[%s1542_s3 + $0x8] sm:$0xff]   ;;  %s973_s30 = sshll.u32 %s1547_s25, 2 }
   0xe   : > { %1173 = vmatprep.subr.bf16.mxu0 %v1244_v1  ;;  %1220 = vmatprep.subr.bf16.mxu1 %v1244_v1  ;;  %v256_v4 = vld [vmem:[%s1317_s9] sm:$0xff]  ;;  %v257_v5 = vld [vmem:[%s1317_s9 + $0x8] sm:$0xff]  ;;  %v258_v21 = vld [vmem:[%s1317_s9 + $0x10] sm:$0xff]  ;;  %s1472_s8 = scalar_lea.vmem %s1545_s6, %s973_s30 }
   0xf   : > { %v295_v7 = vmul.f32 %v1327_v6, %v256_v4  ;;  %v296_v8 = vmul.f32 %v1327_v6, %v257_v5  ;;  %v1334_v9 = vld [vmem:[%s1541_s2] ss:$0 sm:$0xff]  ;;  %v273_v11 = vld [vmem:[%s1317_s9 + $0x88] sm:$0xff]  ;;  %v259_v24 = vld [vmem:[%s1317_s9 + $0x18] sm:$0xff]  ;;  %v297_v32 = vmul.f32 %v1327_v6, %v258_v21 }
  0x10   : > { %v272_v10 = vld [vmem:[%s1317_s9 + $0x80] sm:$0xff]  ;;  %v312_v13 = vmul.f32 %v1327_v6, %v273_v11  ;;  %v274_v25 = vld [vmem:[%s1317_s9 + $0x90] sm:$0xff]  ;;  %v275_v26 = vld [vmem:[%s1317_s9 + $0x98] sm:$0xff]  ;;  %v298_v35 = vmul.f32 %v1327_v6, %v259_v24 }
  0x11   : > { %1174 = vmatpush3.bf16.msra.mxu0 %v1244_v1  ;;  %1228 = vmatpush3.bf16.msra.mxu1 %v1244_v1  ;;  %v311_v12 = vmul.f32 %v1327_v6, %v272_v10  ;;  %v334_v14 = vadd.f32 %v1334_v9, %v295_v7  ;;  %v335_v15 = vadd.f32 %v1334_v9, %v296_v8  ;;  %v260_v28 = vld [vmem:[%s1317_s9 + $0x20] sm:$0xff]  ;;  %v261_v29 = vld [vmem:[%s1317_s9 + $0x28] sm:$0xff]  ;;  %v262_v44 = vld [vmem:[%s1317_s9 + $0x30] sm:$0xff] }
  0x12   : > { %1175 = vmatprep.subr.bf16.mxu0 %v1245_v2  ;;  %1221 = vmatprep.subr.bf16.mxu1 %v1245_v2  ;;  %v351_v18 = vadd.f32 %v1334_v9, %v312_v13  ;;  %v276_v33 = vld [vmem:[%s1317_s9 + $0xa0] sm:$0xff]  ;;  %v277_v34 = vld [vmem:[%s1317_s9 + $0xa8] sm:$0xff]  ;;  %v313_v36 = vmul.f32 %v1327_v6, %v274_v25  ;;  %v314_v37 = vmul.f32 %v1327_v6, %v275_v26  ;;  %v263_v48 = vld [vmem:[%s1317_s9 + $0x38] sm:$0xff] }
  0x13   : > { %v350_v17 = vadd.f32 %v1334_v9, %v311_v12  ;;  %v366_v19 = vmax.f32 %v334_v14, 0.0  ;;  %v367_v20 = vmax.f32 %v335_v15, 0.0  ;;  %v299_v38 = vmul.f32 %v1327_v6, %v260_v28  ;;  %v278_v49 = vld [vmem:[%s1317_s9 + $0xb0] sm:$0xff]  ;;  %v279_v50 = vld [vmem:[%s1317_s9 + $0xb8] sm:$0xff]  ;;  %v264_v53 = vld [vmem:[%s1317_s9 + $0x40] sm:$0xff] }
  0x14   : > { %v383_v23 = vmax.f32 %v351_v18, 0.0  ;;  %v300_v39 = vmul.f32 %v1327_v6, %v261_v29  ;;  %v315_v40 = vmul.f32 %v1327_v6, %v276_v33  ;;  %v316_v41 = vmul.f32 %v1327_v6, %v277_v34  ;;  %v265_v57 = vld [vmem:[%s1317_s9 + $0x48] sm:$0xff]  ;;  %v280_v58 = vld [vmem:[%s1317_s9 + $0xc0] sm:$0xff]  ;;  %v267_v25 = vld [vmem:[%s1317_s9 + $0x58] sm:$0xff] }
  0x15   : > { %1176 = vmatpush3.bf16.msra.mxu0 %v1245_v2  ;;  %1229 = vmatpush3.bf16.msra.mxu1 %v1245_v2  ;;  %v382_v22 = vmax.f32 %v350_v17, 0.0  ;;  %v398_v27 = vpack.c.bf16 %v367_v20, %v366_v19  ;;  %v336_v43 = vadd.f32 %v1334_v9, %v297_v32  ;;  %v337_v45 = vadd.f32 %v1334_v9, %v298_v35  ;;  %v281_v59 = vld [vmem:[%s1317_s9 + $0xc8] sm:$0xff]  ;;  %v1250_v60 = vld [vmem:[%s1542_s3] sm:$0xff]   ;;  %v266_v20 = vld [vmem:[%s1317_s9 + $0x50] sm:$0xff] }
  0x16   : > { %1177 = vmatprep.subr.bf16.mxu0 %v1246_v3  ;;  %1222 = vmatprep.subr.bf16.mxu1 %v1246_v3  ;;  %v352_v46 = vadd.f32 %v1334_v9, %v313_v36  ;;  %v353_v47 = vadd.f32 %v1334_v9, %v314_v37  ;;  %v338_v51 = vadd.f32 %v1334_v9, %v299_v38  ;;  %v282_v26 = vld [vmem:[%s1317_s9 + $0xd0] sm:$0xff]  ;;  %v269_v36 = vld [vmem:[%s1317_s9 + $0x68] sm:$0xff]  ;;  %v284_v37 = vld [vmem:[%s1317_s9 + $0xe0] sm:$0xff] }
  0x17   : > { %v406_v31 = vpack.c.bf16 %v383_v23, %v382_v22  ;;  %1187 = vmatprep.mubr.bf16.mxu0 %v398_v27  ;;  %v339_v52 = vadd.f32 %v1334_v9, %v300_v39  ;;  %v354_v54 = vadd.f32 %v1334_v9, %v315_v40  ;;  %v355_v55 = vadd.f32 %v1334_v9, %v316_v41  ;;  %v283_v27 = vld [vmem:[%s1317_s9 + $0xd8] sm:$0xff]  ;;  %v285_v38 = vld [vmem:[%s1317_s9 + $0xe8] sm:$0xff] }
  0x18   : > { %v301_v56 = vmul.f32 %v1327_v6, %v262_v44  ;;  %v368_v61 = vmax.f32 %v336_v43, 0.0  ;;  %v302_v62 = vmul.f32 %v1327_v6, %v263_v48  ;;  %v317_v63 = vmul.f32 %v1327_v6, %v278_v49 }
  0x19   : > { %1178 = vmatpush3.bf16.msra.mxu0 %v1246_v3  ;;  %1230 = vmatpush3.bf16.msra.mxu1 %v1246_v3  ;;  %v318_v0 = vmul.f32 %v1327_v6, %v279_v50  ;;  %v369_v1 = vmax.f32 %v337_v45, 0.0  ;;  %v384_v2 = vmax.f32 %v352_v46, 0.0  ;;  %v385_v3 = vmax.f32 %v353_v47, 0.0 }
  0x1a   : > { %1179 = vmatprep.subr.bf16.mxu0 %v1247_v16  ;;  %1223 = vmatprep.subr.bf16.mxu1 %v1247_v16  ;;  %v303_v4 = vmul.f32 %v1327_v6, %v264_v53  ;;  %v370_v5 = vmax.f32 %v338_v51, 0.0  ;;  %v304_v7 = vmul.f32 %v1327_v6, %v265_v57  ;;  %v319_v8 = vmul.f32 %v1327_v6, %v280_v58  ;;  %v270_v58 = vld [vmem:[%s1317_s9 + $0x70] sm:$0xff] }
  0x1b   : > { %1203 = vmatprep.mubr.bf16.mxu1 %v406_v31  ;;  %v320_v10 = vmul.f32 %v1327_v6, %v281_v59  ;;  %v371_v11 = vmax.f32 %v339_v52, 0.0  ;;  %v386_v12 = vmax.f32 %v354_v54, 0.0  ;;  %v387_v13 = vmax.f32 %v355_v55, 0.0  ;;  %v268_v31 = vld [vmem:[%s1317_s9 + $0x60] sm:$0xff] }
  0x1c   : > { %v340_v14 = vadd.f32 %v1334_v9, %v301_v56  ;;  %v341_v15 = vadd.f32 %v1334_v9, %v302_v62  ;;  %v357_v17 = vadd.f32 %v1334_v9, %v318_v0  ;;  %v399_v18 = vpack.c.bf16 %v369_v1, %v368_v61  ;;  %v286_v0 = vld [vmem:[%s1317_s9 + $0xf0] sm:$0xff]  ;;  %v287_v1 = vld [vmem:[%s1317_s9 + $0xf8] sm:$0xff] }
  0x1d   : > { %1180 = vmatpush3.bf16.msra.mxu0 %v1247_v16  ;;  %1231 = vmatpush3.bf16.msra.mxu1 %v1247_v16  ;;  %v356_v16 = vadd.f32 %v1334_v9, %v317_v63  ;;  %v342_v19 = vadd.f32 %v1334_v9, %v303_v4  ;;  %v407_v21 = vpack.c.bf16 %v385_v3, %v384_v2  ;;  %v271_v63 = vld [vmem:[%s1317_s9 + $0x78] sm:$0xff] }
  0x1e   : > { %1181 = vmatprep.subr.bf16.mxu0 %v1248_v30  ;;  %1224 = vmatprep.subr.bf16.mxu1 %v1248_v30  ;;  %v343_v22 = vadd.f32 %v1334_v9, %v304_v7  ;;  %v358_v23 = vadd.f32 %v1334_v9, %v319_v8  ;;  %v359_v24 = vadd.f32 %v1334_v9, %v320_v10  ;;  %v373_v32 = vmax.f32 %v341_v15, 0.0 }
  0x1f   : > { %v400_v28 = vpack.c.bf16 %v371_v11, %v370_v5  ;;  %v408_v29 = vpack.c.bf16 %v387_v13, %v386_v12  ;;  %v388_v33 = vmax.f32 %v356_v16, 0.0  ;;  %v389_v34 = vmax.f32 %v357_v17, 0.0 }
  0x20   : > { %v305_v35 = vmul.f32 %v1327_v6, %v266_v20  ;;  %v374_v39 = vmax.f32 %v342_v19, 0.0  ;;  %v306_v40 = vmul.f32 %v1327_v6, %v267_v25  ;;  %v321_v41 = vmul.f32 %v1327_v6, %v282_v26 }
  0x21   : > { %1182 = vmatpush3.bf16.msra.mxu0 %v1248_v30  ;;  %1232 = vmatpush3.bf16.msra.mxu1 %v1248_v30  ;;  %v372_v30 = vmax.f32 %v340_v14, 0.0  ;;  %v375_v43 = vmax.f32 %v343_v22, 0.0  ;;  %v390_v44 = vmax.f32 %v358_v23, 0.0  ;;  %v391_v45 = vmax.f32 %v359_v24, 0.0 }
  0x22   : > { %1183 = vmatprep.subr.bf16.mxu0 %v1249_v42  ;;  %1225 = vmatprep.subr.bf16.mxu1 %v1249_v42  ;;  %v307_v46 = vmul.f32 %v1327_v6, %v268_v31  ;;  %v308_v47 = vmul.f32 %v1327_v6, %v269_v36  ;;  %v323_v48 = vmul.f32 %v1327_v6, %v284_v37 }
  0x23   : > { %v324_v49 = vmul.f32 %v1327_v6, %v285_v38  ;;  %v344_v50 = vadd.f32 %v1334_v9, %v305_v35  ;;  %v345_v51 = vadd.f32 %v1334_v9, %v306_v40  ;;  %v360_v52 = vadd.f32 %v1334_v9, %v321_v41 }
  0x24   : > { %v401_v54 = vpack.c.bf16 %v373_v32, %v372_v30  ;;  %v409_v55 = vpack.c.bf16 %v389_v34, %v388_v33  ;;  %v402_v56 = vpack.c.bf16 %v375_v43, %v374_v39  ;;  %v410_v57 = vpack.c.bf16 %v391_v45, %v390_v44  ;;  %v1450_v33 = vld [vmem:[%s1544_s5] ss:$0 sm:$0xff] }
  0x25   : > { %1184 = vmatpush3.bf16.msra.mxu0 %v1249_v42  ;;  %1233 = vmatpush3.bf16.msra.mxu1 %v1249_v42  ;;  %v322_v42 = vmul.f32 %v1327_v6, %v283_v27  ;;  %v346_v59 = vadd.f32 %v1334_v9, %v307_v46  ;;  %v362_v61 = vadd.f32 %v1334_v9, %v323_v48  ;;  %v376_v2 = vmax.f32 %v344_v50, 0.0 }
  0x26   : > { %1185 = vmatprep.subr.bf16.mxu0 %v1250_v60  ;;  %1226 = vmatprep.subr.bf16.mxu1 %v1250_v60  ;;  %v363_v62 = vadd.f32 %v1334_v9, %v324_v49  ;;  %v377_v3 = vmax.f32 %v345_v51, 0.0  ;;  %v392_v4 = vmax.f32 %v360_v52, 0.0  ;;  %v309_v7 = vmul.f32 %v1327_v6, %v270_v58 }
  0x27   : > { %v361_v53 = vadd.f32 %v1334_v9, %v322_v42  ;;  %v310_v8 = vmul.f32 %v1327_v6, %v271_v63  ;;  %v325_v10 = vmul.f32 %v1327_v6, %v286_v0  ;;  %v326_v11 = vmul.f32 %v1327_v6, %v287_v1 }
  0x28   : > { %v378_v12 = vmax.f32 %v346_v59, 0.0  ;;  %v394_v14 = vmax.f32 %v362_v61, 0.0  ;;  %v395_v15 = vmax.f32 %v363_v62, 0.0  ;;  %v403_v16 = vpack.c.bf16 %v377_v3, %v376_v2 }
  0x29   : > { %1186 = vmatpush3.bf16.msra.mxu0 %v1250_v60  ;;  %1234 = vmatpush3.bf16.msra.mxu1 %v1250_v60  ;;  %v347_v60 = vadd.f32 %v1334_v9, %v308_v47  ;;  %v393_v5 = vmax.f32 %v361_v53, 0.0  ;;  %v349_v19 = vadd.f32 %v1334_v9, %v310_v8  ;;  %v364_v20 = vadd.f32 %v1334_v9, %v325_v10 }
  0x2a   : > { %v412_v23 = vpack.c.bf16 %v395_v15, %v394_v14 }
  0x2b   : > { %v379_v13 = vmax.f32 %v347_v60, 0.0  ;;  %v411_v17 = vpack.c.bf16 %v393_v5, %v392_v4  ;;  %v381_v24 = vmax.f32 %v349_v19, 0.0  ;;  %v396_v25 = vmax.f32 %v364_v20, 0.0 }
  0x2c   : > { %1188 = vmatmul.mubr.bf16.vlgmr.msra.gmra.mxu0 %v399_v18  ;;  %1204 = vmatmul.mubr.bf16.vlgmr.msra.gmra.mxu1 %v407_v21  ;;  %v348_v18 = vadd.f32 %v1334_v9, %v309_v7  ;;  %v365_v21 = vadd.f32 %v1334_v9, %v326_v11 }
  0x2d   : > { %1191 = vmatprep.mubr.bf16.mxu0 %v400_v28  ;;  %1207 = vmatprep.mubr.bf16.mxu1 %v408_v29  ;;  %v404_v22 = vpack.c.bf16 %v379_v13, %v378_v12  ;;  %v1443_v29 = vld [vmem:[%s1543_s4] ss:$0 sm:$0xff] }
  0x2e   : > { %v380_v6 = vmax.f32 %v348_v18, 0.0  ;;  %v397_v26 = vmax.f32 %v365_v21, 0.0 }
  0x30   : > { %v405_v27 = vpack.c.bf16 %v381_v24, %v380_v6  ;;  %v413_v28 = vpack.c.bf16 %v397_v26, %v396_v25 }
  0x34   : > { %1192 = vmatmul.mubr.bf16.gmra.mxu0 %v401_v54  ;;  %1208 = vmatmul.mubr.bf16.gmra.mxu1 %v409_v55 }
  0x35   : > { %1195 = vmatprep.mubr.bf16.mxu0 %v402_v56  ;;  %1211 = vmatprep.mubr.bf16.mxu1 %v410_v57 }
  0x3c   : > { %1196 = vmatmul.mubr.bf16.gmra.mxu0 %v403_v16  ;;  %1212 = vmatmul.mubr.bf16.gmra.mxu1 %v411_v17 }
  0x3d   : > { %1199 = vmatprep.mubr.bf16.mxu0 %v404_v22  ;;  %1215 = vmatprep.mubr.bf16.mxu1 %v412_v23 }
  0x44   : > { %1200 = vmatmul.mubr.bf16.gmra.mxu0 %v405_v27  ;;  %1216 = vmatmul.mubr.bf16.gmra.mxu1 %v413_v28 }
  0xec   : > { %v1189_v9 = vpop.f32.mrf.mxu0  ;;  %v1205_v30 = vpop.f32.mrf.mxu1 }
  0xed   : > { %v648_v31 = vmul.f32 %v1189_v9, %v1443_v29  ;;  %v664_v32 = vmul.f32 %v1205_v30, %v1443_v29 }
  0xee   : > { %v512_v34 = vpop.f32.mrf.mxu0  ;;  %v576_v35 = vpop.f32.mrf.mxu1 }
  0xef   : > { %v646_v36 = vmul.f32 %v1443_v29, %v512_v34  ;;  %v662_v37 = vmul.f32 %v1443_v29, %v576_v35  ;;  %v687_v40 = vadd.f32 %v1450_v33, %v648_v31  ;;  %v703_v41 = vadd.f32 %v1450_v33, %v664_v32 }
  0xf0   : > { %v1190_v38 = vpop.f32.mrf.mxu0  ;;  %v1206_v39 = vpop.f32.mrf.mxu1 }
  0xf1   : > { %v649_v42 = vmul.f32 %v1190_v38, %v1443_v29  ;;  %v665_v43 = vmul.f32 %v1206_v39, %v1443_v29  ;;  %v685_v46 = vadd.f32 %v1450_v33, %v646_v36  ;;  %v701_v47 = vadd.f32 %v1450_v33, %v662_v37 }
  0xf2   : > { %v515_v44 = vpop.f32.mrf.mxu0  ;;  %v579_v45 = vpop.f32.mrf.mxu1  ;;  %v719_v54 = vmax.f32 %v687_v40, 0.0  ;;  %v735_v55 = vmax.f32 %v703_v41, 0.0 }
  0xf3   : > { %v647_v48 = vmul.f32 %v1443_v29, %v515_v44  ;;  %v663_v49 = vmul.f32 %v1443_v29, %v579_v45  ;;  %v688_v50 = vadd.f32 %v1450_v33, %v649_v42  ;;  %v704_v51 = vadd.f32 %v1450_v33, %v665_v43 }
  0xf4   : > { %v1193_v52 = vpop.f32.mrf.mxu0  ;;  %v1209_v53 = vpop.f32.mrf.mxu1  ;;  %v717_v0 = vmax.f32 %v685_v46, 0.0  ;;  %v733_v1 = vmax.f32 %v701_v47, 0.0 }
  0xf5   : > { %v686_v56 = vadd.f32 %v1450_v33, %v647_v48  ;;  %v702_v57 = vadd.f32 %v1450_v33, %v663_v49  ;;  %v720_v58 = vmax.f32 %v688_v50, 0.0  ;;  %v736_v59 = vmax.f32 %v704_v51, 0.0 }
  0xf6   : > { %v652_v60 = vmul.f32 %v1193_v52, %v1443_v29  ;;  %v668_v61 = vmul.f32 %v1209_v53, %v1443_v29  ;;  %v528_v62 = vpop.f32.mrf.mxu0  ;;  %v592_v63 = vpop.f32.mrf.mxu1 }
  0xf7   : > { %v718_v2 = vmax.f32 %v686_v56, 0.0  ;;  %v734_v3 = vmax.f32 %v702_v57, 0.0  ;;  %v1060_v4 = vpack.c.bf16 %v720_v58, %v719_v54  ;;  %v1100_v5 = vpack.c.bf16 %v736_v59, %v735_v55 }
  0xf8   : > { %v650_v7 = vmul.f32 %v1443_v29, %v528_v62  ;;  %v666_v8 = vmul.f32 %v1443_v29, %v592_v63  ;;  %v1194_v10 = vpop.f32.mrf.mxu0  ;;  %v1210_v11 = vpop.f32.mrf.mxu1  ;;  %v691_v14 = vadd.f32 %v1450_v33, %v652_v60  ;;  %v707_v15 = vadd.f32 %v1450_v33, %v668_v61 }
  0xf9   : > { %v1055_v12 = vpack.c.bf16 %v718_v2, %v717_v0  ;;  %v1095_v13 = vpack.c.bf16 %v734_v3, %v733_v1  ;;  %1132 = vst [vmem:[%s1472_s8 + $0x8] sm:$0xff] %v1060_v4   ;;  %1140 = vst [vmem:[%s1472_s8 + $0x48] sm:$0xff] %v1100_v5   ;;  %v653_v16 = vmul.f32 %v1194_v10, %v1443_v29 }
  0xfa   : > { %v669_v17 = vmul.f32 %v1210_v11, %v1443_v29  ;;  %v531_v18 = vpop.f32.mrf.mxu0  ;;  %v595_v19 = vpop.f32.mrf.mxu1  ;;  %v689_v20 = vadd.f32 %v1450_v33, %v650_v7  ;;  %v705_v21 = vadd.f32 %v1450_v33, %v666_v8  ;;  %v723_v31 = vmax.f32 %v691_v14, 0.0 }
  0xfb   : > { %1056 = vst [vmem:[%s1472_s8] sm:$0xff] %v1055_v12   ;;  %1139 = vst [vmem:[%s1472_s8 + $0x40] sm:$0xff] %v1095_v13   ;;  %v651_v22 = vmul.f32 %v1443_v29, %v531_v18  ;;  %v667_v23 = vmul.f32 %v1443_v29, %v595_v19  ;;  %v692_v6 = vadd.f32 %v1450_v33, %v653_v16  ;;  %v739_v32 = vmax.f32 %v707_v15, 0.0 }
  0xfc   : > { %v708_v24 = vadd.f32 %v1450_v33, %v669_v17  ;;  %v1197_v25 = vpop.f32.mrf.mxu0  ;;  %v1213_v26 = vpop.f32.mrf.mxu1  ;;  %v721_v38 = vmax.f32 %v689_v20, 0.0  ;;  %v737_v39 = vmax.f32 %v705_v21, 0.0 }
  0xfd   : > { %v690_v27 = vadd.f32 %v1450_v33, %v651_v22  ;;  %v706_v28 = vadd.f32 %v1450_v33, %v667_v23  ;;  %v656_v9 = vmul.f32 %v1197_v25, %v1443_v29  ;;  %v672_v30 = vmul.f32 %v1213_v26, %v1443_v29 }
  0xfe   : > { %v724_v34 = vmax.f32 %v692_v6, 0.0  ;;  %v740_v35 = vmax.f32 %v708_v24, 0.0  ;;  %v544_v36 = vpop.f32.mrf.mxu0  ;;  %v608_v37 = vpop.f32.mrf.mxu1 }
  0xff   : > { %v722_v40 = vmax.f32 %v690_v27, 0.0  ;;  %v738_v41 = vmax.f32 %v706_v28, 0.0  ;;  %v654_v44 = vmul.f32 %v1443_v29, %v544_v36  ;;  %v670_v45 = vmul.f32 %v1443_v29, %v608_v37 }
 0x100   : > { %v1070_v42 = vpack.c.bf16 %v724_v34, %v723_v31  ;;  %v1110_v43 = vpack.c.bf16 %v740_v35, %v739_v32  ;;  %v1198_v46 = vpop.f32.mrf.mxu0  ;;  %v1214_v47 = vpop.f32.mrf.mxu1  ;;  %v695_v50 = vadd.f32 %v1450_v33, %v656_v9  ;;  %v711_v51 = vadd.f32 %v1450_v33, %v672_v30 }
 0x101   : > { %v1065_v48 = vpack.c.bf16 %v722_v40, %v721_v38  ;;  %v1105_v49 = vpack.c.bf16 %v738_v41, %v737_v39  ;;  %v657_v52 = vmul.f32 %v1198_v46, %v1443_v29  ;;  %v673_v53 = vmul.f32 %v1214_v47, %v1443_v29 }
 0x102   : > { %1134 = vst [vmem:[%s1472_s8 + $0x18] sm:$0xff] %v1070_v42   ;;  %1142 = vst [vmem:[%s1472_s8 + $0x58] sm:$0xff] %v1110_v43   ;;  %v547_v54 = vpop.f32.mrf.mxu0  ;;  %v611_v55 = vpop.f32.mrf.mxu1  ;;  %v693_v56 = vadd.f32 %v1450_v33, %v654_v44  ;;  %v709_v57 = vadd.f32 %v1450_v33, %v670_v45  ;;  %v727_v0 = vmax.f32 %v695_v50, 0.0  ;;  %v743_v1 = vmax.f32 %v711_v51, 0.0 }
 0x103   : > { %1133 = vst [vmem:[%s1472_s8 + $0x10] sm:$0xff] %v1065_v48   ;;  %1141 = vst [vmem:[%s1472_s8 + $0x50] sm:$0xff] %v1105_v49   ;;  %v655_v58 = vmul.f32 %v1443_v29, %v547_v54  ;;  %v671_v59 = vmul.f32 %v1443_v29, %v611_v55  ;;  %v696_v60 = vadd.f32 %v1450_v33, %v657_v52 }
 0x104   : > { %v712_v61 = vadd.f32 %v1450_v33, %v673_v53  ;;  %v1201_v62 = vpop.f32.mrf.mxu0  ;;  %v1217_v63 = vpop.f32.mrf.mxu1  ;;  %v725_v12 = vmax.f32 %v693_v56, 0.0  ;;  %v741_v13 = vmax.f32 %v709_v57, 0.0 }
 0x105   : > { %v694_v2 = vadd.f32 %v1450_v33, %v655_v58  ;;  %v710_v3 = vadd.f32 %v1450_v33, %v671_v59  ;;  %v728_v4 = vmax.f32 %v696_v60, 0.0  ;;  %v660_v7 = vmul.f32 %v1201_v62, %v1443_v29 }
 0x106   : > { %v744_v5 = vmax.f32 %v712_v61, 0.0  ;;  %v676_v8 = vmul.f32 %v1217_v63, %v1443_v29  ;;  %v560_v10 = vpop.f32.mrf.mxu0  ;;  %v624_v11 = vpop.f32.mrf.mxu1 }
 0x107   : > { %v726_v14 = vmax.f32 %v694_v2, 0.0  ;;  %v742_v15 = vmax.f32 %v710_v3, 0.0  ;;  %v1080_v16 = vpack.c.bf16 %v728_v4, %v727_v0  ;;  %v658_v18 = vmul.f32 %v1443_v29, %v560_v10 }
 0x108   : > { %v1120_v17 = vpack.c.bf16 %v744_v5, %v743_v1  ;;  %v674_v19 = vmul.f32 %v1443_v29, %v624_v11  ;;  %v1202_v20 = vpop.f32.mrf.mxu0  ;;  %v1218_v21 = vpop.f32.mrf.mxu1  ;;  %v699_v6 = vadd.f32 %v1450_v33, %v660_v7  ;;  %v715_v24 = vadd.f32 %v1450_v33, %v676_v8 }
 0x109   : > { %v1075_v22 = vpack.c.bf16 %v726_v14, %v725_v12  ;;  %v1115_v23 = vpack.c.bf16 %v742_v15, %v741_v13  ;;  %1136 = vst [vmem:[%s1472_s8 + $0x28] sm:$0xff] %v1080_v16   ;;  %v661_v25 = vmul.f32 %v1202_v20, %v1443_v29  ;;  %v677_v26 = vmul.f32 %v1218_v21, %v1443_v29 }
 0x10a   : > { %1144 = vst [vmem:[%s1472_s8 + $0x68] sm:$0xff] %v1120_v17   ;;  %v563_v27 = vpop.f32.mrf.mxu0  ;;  %v627_v28 = vpop.f32.mrf.mxu1  ;;  %v697_v9 = vadd.f32 %v1450_v33, %v658_v18  ;;  %v713_v30 = vadd.f32 %v1450_v33, %v674_v19  ;;  %v731_v38 = vmax.f32 %v699_v6, 0.0  ;;  %v747_v39 = vmax.f32 %v715_v24, 0.0 }
 0x10b   : > { %1135 = vst [vmem:[%s1472_s8 + $0x20] sm:$0xff] %v1075_v22   ;;  %1143 = vst [vmem:[%s1472_s8 + $0x60] sm:$0xff] %v1115_v23   ;;  %v659_v31 = vmul.f32 %v1443_v29, %v563_v27  ;;  %v675_v32 = vmul.f32 %v1443_v29, %v627_v28  ;;  %v700_v34 = vadd.f32 %v1450_v33, %v661_v25 }
 0x10c   : > { %v716_v35 = vadd.f32 %v1450_v33, %v677_v26  ;;  %v729_v42 = vmax.f32 %v697_v9, 0.0  ;;  %v745_v43 = vmax.f32 %v713_v30, 0.0 }
 0x10d   : > { %v698_v36 = vadd.f32 %v1450_v33, %v659_v31  ;;  %v714_v37 = vadd.f32 %v1450_v33, %v675_v32  ;;  %v732_v40 = vmax.f32 %v700_v34, 0.0 }
 0x10e   : > { %v748_v41 = vmax.f32 %v716_v35, 0.0 }
 0x10f   : > { %v730_v44 = vmax.f32 %v698_v36, 0.0  ;;  %v746_v29 = vmax.f32 %v714_v37, 0.0  ;;  %v1090_v45 = vpack.c.bf16 %v732_v40, %v731_v38 }
 0x110   : > { %v1130_v46 = vpack.c.bf16 %v748_v41, %v747_v39 }
 0x111   : > { %v1085_v47 = vpack.c.bf16 %v730_v44, %v729_v42  ;;  %v1125_v48 = vpack.c.bf16 %v746_v29, %v745_v43  ;;  %1138 = vst [vmem:[%s1472_s8 + $0x38] sm:$0xff] %v1090_v45  }
 0x112   : > { %1146 = vst [vmem:[%s1472_s8 + $0x78] sm:$0xff] %v1130_v46  }
 0x113   : > { %1137 = vst [vmem:[%s1472_s8 + $0x30] sm:$0xff] %v1085_v47   ;;  %1145 = vst [vmem:[%s1472_s8 + $0x70] sm:$0xff] %v1125_v48  }
 0x114 PF: > { %s16_s21 = sadd.s32 1, %s1257_s21  }
 0x115   : > { %p13_p4 = scmp.ge.s32.totalorder %s16_s21, 4  }
 0x117   :  { %15 = sbr.rel (!%p13_p4) target bundleno = 1 (0x1), region = 74 }

// kernel: preact_bottleneck_forward.6
= control target key start
LH: loop header
LB: loop body
LE: loop exit
PB: predicated region body
PF: predicated region fallthrough
CT: control target
= control target key end

     0   :  { %s1051_s15 = smov 0   ;;  %s1053_s16 = smov 0   ;;  %s1176_s0 = inlined_call_operand.vmem [shape: bf16[9,128,128], index: 0, kind: input, shape index: {}]   ;;  %s1177_s1 = inlined_call_operand.vmem [shape: bf16[9,128,128], index: 1, kind: input, shape index: {}]   ;;  %s1178_s2 = inlined_call_operand.vmem [shape: f32[1,128], index: 2, kind: input, shape index: {}]   ;;  %s1179_s3 = inlined_call_operand.vmem [shape: f32[1,128], index: 3, kind: input, shape index: {}]   ;;  %s1180_s4 = inlined_call_operand.vmem [shape: bf16[128,128], index: 4, kind: output, shape index: {}]  }
   0x1   :  { %s1055_s17 = smov 0  }
   0x2 LB: > { %s23_s18 = sadd.s32 1, %s1019_s16  ;;  %p786_p0 = scmp.ge.s32.totalorder %s1023_s17, 1  ;;  %s1023_s17 = sphi %s1055_s17, %s14_s17   ;;  %s1019_s16 = sphi %s1053_s16, %s1182_s16   ;;  %s1015_s15 = sphi %s1051_s15, %s1181_s15  }
   0x3   : > { %p24_p1 = scmp.ge.s32.totalorder %s23_s18, 9  ;;  %p191_p2 = scmp.lt.s32.totalorder %s1023_s17, 10 }
   0x5   : > { %s1184_s18 = smov (%p24_p1, %s23_s18), 0  ;;  %p192_p3 = pnand %p786_p0, %p191_p2 }
   0x6   : > { %p227_p4 = scmp.lt.s32.totalorder (!%p192_p3), %s1015_s15, 8  ;;  %p791_p5 = scmp.ne.s32.totalorder (!%p192_p3), %s1015_s15, 0 }
   0x7   : > { %195 = sbr.rel (%p192_p3) target bundleno = 291 (0x123), region = 36 }
   0xc   : > { %s228_s19 = scalar_select %p227_p4, %s1015_s15, 8 }
   0xd   : > { %251 = sbr.rel (%p791_p5) target bundleno = 27 (0x1b), region = 40 }
   0xe   : > { %s831_s20 = sshll.u32 %s228_s19, 6 }
   0xf   : > { %s1076_s23 = scalar_lea.vmem %s1176_s0, %s831_s20  ;;  %s1081_s26 = scalar_lea.vmem %s1177_s1, %s831_s20 }
  0x12   : > { %v1025_v0 = vmov 0.0  }
  0x13   : > { %252 = vst [vmem:[#allocation2 + $0x30] sm:$0xff] %v1025_v0  ;;  %253 = vst [vmem:[#allocation2] sm:$0xff] %v1025_v0 }
  0x14   : > { %254 = vst [vmem:[#allocation2 + $0x58] sm:$0xff] %v1025_v0  ;;  %255 = vst [vmem:[#allocation2 + $0x18] sm:$0xff] %v1025_v0 }
  0x15   : > { %256 = vst [vmem:[#allocation2 + $0x50] sm:$0xff] %v1025_v0  ;;  %257 = vst [vmem:[#allocation2 + $0x68] sm:$0xff] %v1025_v0 }
  0x16   : > { %258 = vst [vmem:[#allocation2 + $0x8] sm:$0xff] %v1025_v0  ;;  %259 = vst [vmem:[#allocation2 + $0x48] sm:$0xff] %v1025_v0 }
  0x17   : > { %260 = vst [vmem:[#allocation2 + $0x40] sm:$0xff] %v1025_v0  ;;  %261 = vst [vmem:[#allocation2 + $0x20] sm:$0xff] %v1025_v0 }
  0x18   : > { %262 = vst [vmem:[#allocation2 + $0x10] sm:$0xff] %v1025_v0  ;;  %263 = vst [vmem:[#allocation2 + $0x38] sm:$0xff] %v1025_v0 }
  0x19   : > { %264 = vst [vmem:[#allocation2 + $0x60] sm:$0xff] %v1025_v0  ;;  %265 = vst [vmem:[#allocation2 + $0x70] sm:$0xff] %v1025_v0 }
  0x1a   : > { %266 = vst [vmem:[#allocation2 + $0x78] sm:$0xff] %v1025_v0  ;;  %267 = vst [vmem:[#allocation2 + $0x28] sm:$0xff] %v1025_v0 }
  0x1b PF: > { %v985_v1 = vld [vmem:[%s1081_s26 + $0x38] sm:$0xff]   ;;  %v986_v2 = vld [vmem:[%s1081_s26 + $0x30] sm:$0xff]   ;;  %v987_v3 = vld [vmem:[%s1081_s26 + $0x28] sm:$0xff]   ;;  %p808_p6 = scmp.ne.s32.totalorder %s1015_s15, 8 }
  0x1c   : > { %912 = vmatprep.subr.bf16.mxu0 %v985_v1  ;;  %944 = vmatprep.subr.bf16.mxu1 %v985_v1  ;;  %v988_v4 = vld [vmem:[%s1081_s26 + $0x20] sm:$0xff]   ;;  %v989_v7 = vld [vmem:[%s1081_s26 + $0x18] sm:$0xff]   ;;  %v990_v8 = vld [vmem:[%s1081_s26 + $0x10] sm:$0xff]  }
  0x1d   : > { %913 = vmatpush3.bf16.msra.mxu0 %v985_v1  ;;  %952 = vmatpush3.bf16.msra.mxu1 %v985_v1  ;;  %v993_v5 = vld [vmem:[%s1076_s23] sm:$0xff]   ;;  %v991_v9 = vld [vmem:[%s1081_s26 + $0x8] sm:$0xff]   ;;  %v997_v13 = vld [vmem:[%s1076_s23 + $0x10] sm:$0xff]  }
  0x1e   : > { %914 = vmatprep.subr.bf16.mxu0 %v986_v2  ;;  %945 = vmatprep.subr.bf16.mxu1 %v986_v2  ;;  %v994_v6 = vld [vmem:[%s1076_s23 + $0x20] sm:$0xff]   ;;  %v995_v11 = vld [vmem:[%s1076_s23 + $0x8] sm:$0xff]   ;;  %v998_v14 = vld [vmem:[%s1076_s23 + $0x30] sm:$0xff]  }
  0x1f   : > { %928 = vmatprep.mubr.bf16.mxu0 %v993_v5  ;;  %936 = vmatprep.mubr.bf16.mxu1 %v994_v6  ;;  %v992_v10 = vld [vmem:[%s1081_s26] sm:$0xff]   ;;  %v996_v12 = vld [vmem:[%s1076_s23 + $0x28] sm:$0xff]   ;;  %v999_v15 = vld [vmem:[%s1076_s23 + $0x18] sm:$0xff]  }
  0x20   : > { %v1000_v16 = vld [vmem:[%s1076_s23 + $0x38] sm:$0xff]   ;;  %v278_v18 = vld [vmem:[#allocation2 + $0x10] sm:$0xff]  ;;  %v276_v22 = vld [vmem:[#allocation2 + $0x40] sm:$0xff] }
  0x21   : > { %915 = vmatpush3.bf16.msra.mxu0 %v986_v2  ;;  %953 = vmatpush3.bf16.msra.mxu1 %v986_v2  ;;  %v270_v17 = vld [vmem:[#allocation2 + $0x58] sm:$0xff]  ;;  %v268_v21 = vld [vmem:[#allocation2 + $0x30] sm:$0xff]  ;;  %v269_v33 = vld [vmem:[#allocation2] sm:$0xff] }
  0x22   : > { %916 = vmatprep.subr.bf16.mxu0 %v987_v3  ;;  %946 = vmatprep.subr.bf16.mxu1 %v987_v3  ;;  %v271_v27 = vld [vmem:[#allocation2 + $0x18] sm:$0xff]  ;;  %v277_v34 = vld [vmem:[#allocation2 + $0x20] sm:$0xff]  ;;  %v274_v39 = vld [vmem:[#allocation2 + $0x8] sm:$0xff] }
  0x23   : > { %v279_v28 = vld [vmem:[#allocation2 + $0x38] sm:$0xff]  ;;  %v272_v45 = vld [vmem:[#allocation2 + $0x50] sm:$0xff]  ;;  %v280_v46 = vld [vmem:[#allocation2 + $0x60] sm:$0xff] }
  0x24   : > { %v282_v40 = vld [vmem:[#allocation2 + $0x78] sm:$0xff]  ;;  %v275_v51 = vld [vmem:[#allocation2 + $0x48] sm:$0xff]  ;;  %v281_v58 = vld [vmem:[#allocation2 + $0x70] sm:$0xff] }
  0x25   : > { %917 = vmatpush3.bf16.msra.mxu0 %v987_v3  ;;  %954 = vmatpush3.bf16.msra.mxu1 %v987_v3  ;;  %v283_v52 = vld [vmem:[#allocation2 + $0x28] sm:$0xff] }
  0x26   : > { %918 = vmatprep.subr.bf16.mxu0 %v988_v4  ;;  %947 = vmatprep.subr.bf16.mxu1 %v988_v4  ;;  %v273_v57 = vld [vmem:[#allocation2 + $0x68] sm:$0xff] }
  0x29   : > { %919 = vmatpush3.bf16.msra.mxu0 %v988_v4  ;;  %955 = vmatpush3.bf16.msra.mxu1 %v988_v4 }
  0x2a   : > { %920 = vmatprep.subr.bf16.mxu0 %v989_v7  ;;  %948 = vmatprep.subr.bf16.mxu1 %v989_v7 }
  0x2d   : > { %921 = vmatpush3.bf16.msra.mxu0 %v989_v7  ;;  %956 = vmatpush3.bf16.msra.mxu1 %v989_v7 }
  0x2e   : > { %922 = vmatprep.subr.bf16.mxu0 %v990_v8  ;;  %949 = vmatprep.subr.bf16.mxu1 %v990_v8 }
  0x31   : > { %923 = vmatpush3.bf16.msra.mxu0 %v990_v8  ;;  %957 = vmatpush3.bf16.msra.mxu1 %v990_v8 }
  0x32   : > { %924 = vmatprep.subr.bf16.mxu0 %v991_v9  ;;  %950 = vmatprep.subr.bf16.mxu1 %v991_v9 }
  0x35   : > { %925 = vmatpush3.bf16.msra.mxu0 %v991_v9  ;;  %958 = vmatpush3.bf16.msra.mxu1 %v991_v9 }
  0x36   : > { %926 = vmatprep.subr.bf16.mxu0 %v992_v10  ;;  %951 = vmatprep.subr.bf16.mxu1 %v992_v10 }
  0x39   : > { %927 = vmatpush3.bf16.msra.mxu0 %v992_v10  ;;  %959 = vmatpush3.bf16.msra.mxu1 %v992_v10 }
  0x3c   : > { %929 = vmatmul.mubr.bf16.vlgmr.msra.gmra.mxu0 %v995_v11  ;;  %937 = vmatmul.mubr.bf16.vlgmr.msra.gmra.mxu1 %v996_v12 }
  0x3d   : > { %932 = vmatprep.mubr.bf16.mxu0 %v997_v13  ;;  %940 = vmatprep.mubr.bf16.mxu1 %v998_v14 }
  0x44   : > { %933 = vmatmul.mubr.bf16.gmra.mxu0 %v999_v15  ;;  %941 = vmatmul.mubr.bf16.gmra.mxu1 %v1000_v16 }
  0xfc   : > { %v930_v19 = vpop.f32.mrf.mxu0  ;;  %v938_v20 = vpop.f32.mrf.mxu1 }
  0xfd   : > { %v511_v23 = vadd.f32 %v930_v19, %v270_v17  ;;  %v519_v24 = vadd.f32 %v938_v20, %v278_v18 }
  0xfe   : > { %v446_v25 = vpop.f32.mrf.mxu0  ;;  %v478_v26 = vpop.f32.mrf.mxu1 }
  0xff   : > { %527 = vst [vmem:[#allocation2 + $0x58] sm:$0xff] %v511_v23  ;;  %535 = vst [vmem:[#allocation2 + $0x10] sm:$0xff] %v519_v24  ;;  %v509_v29 = vadd.f32 %v446_v25, %v268_v21  ;;  %v517_v30 = vadd.f32 %v478_v26, %v276_v22 }
 0x100   : > { %v931_v31 = vpop.f32.mrf.mxu0  ;;  %v939_v32 = vpop.f32.mrf.mxu1 }
 0x101   : > { %525 = vst [vmem:[#allocation2 + $0x30] sm:$0xff] %v509_v29  ;;  %533 = vst [vmem:[#allocation2 + $0x40] sm:$0xff] %v517_v30  ;;  %v512_v35 = vadd.f32 %v931_v31, %v271_v27  ;;  %v520_v36 = vadd.f32 %v939_v32, %v279_v28 }
 0x102   : > { %v449_v37 = vpop.f32.mrf.mxu0  ;;  %v481_v38 = vpop.f32.mrf.mxu1 }
 0x103   : > { %528 = vst [vmem:[#allocation2 + $0x18] sm:$0xff] %v512_v35  ;;  %536 = vst [vmem:[#allocation2 + $0x38] sm:$0xff] %v520_v36  ;;  %v510_v41 = vadd.f32 %v449_v37, %v269_v33  ;;  %v518_v42 = vadd.f32 %v481_v38, %v277_v34 }
 0x104   : > { %v934_v43 = vpop.f32.mrf.mxu0  ;;  %v942_v44 = vpop.f32.mrf.mxu1 }
 0x105   : > { %526 = vst [vmem:[#allocation2] sm:$0xff] %v510_v41  ;;  %534 = vst [vmem:[#allocation2 + $0x20] sm:$0xff] %v518_v42  ;;  %v515_v47 = vadd.f32 %v934_v43, %v274_v39  ;;  %v523_v48 = vadd.f32 %v942_v44, %v282_v40 }
 0x106   : > { %v462_v49 = vpop.f32.mrf.mxu0  ;;  %v494_v50 = vpop.f32.mrf.mxu1 }
 0x107   : > { %531 = vst [vmem:[#allocation2 + $0x8] sm:$0xff] %v515_v47  ;;  %539 = vst [vmem:[#allocation2 + $0x78] sm:$0xff] %v523_v48  ;;  %v513_v53 = vadd.f32 %v462_v49, %v272_v45  ;;  %v521_v54 = vadd.f32 %v494_v50, %v280_v46 }
 0x108   : > { %v935_v55 = vpop.f32.mrf.mxu0  ;;  %v943_v56 = vpop.f32.mrf.mxu1 }
 0x109   : > { %529 = vst [vmem:[#allocation2 + $0x50] sm:$0xff] %v513_v53  ;;  %537 = vst [vmem:[#allocation2 + $0x60] sm:$0xff] %v521_v54  ;;  %v516_v59 = vadd.f32 %v935_v55, %v275_v51  ;;  %v524_v60 = vadd.f32 %v943_v56, %v283_v52  ;;  %544 = sbr.rel (%p808_p6) target bundleno = 291 (0x123), region = 44 }
 0x10a   : > { %v465_v61 = vpop.f32.mrf.mxu0  ;;  %v497_v62 = vpop.f32.mrf.mxu1 }
 0x10b   : > { %532 = vst [vmem:[#allocation2 + $0x48] sm:$0xff] %v516_v59  ;;  %540 = vst [vmem:[#allocation2 + $0x28] sm:$0xff] %v524_v60  ;;  %v514_v63 = vadd.f32 %v465_v61, %v273_v57  ;;  %v522_v0 = vadd.f32 %v497_v62, %v281_v58 }
 0x10d   : > { %530 = vst [vmem:[#allocation2 + $0x68] sm:$0xff] %v514_v63  ;;  %538 = vst [vmem:[#allocation2 + $0x70] sm:$0xff] %v522_v0 }
 0x10e   : > { %v545_v1 = vld [vmem:[#allocation2 + $0x30] sm:$0xff]  ;;  %v546_v2 = vld [vmem:[#allocation2] sm:$0xff]  ;;  %v547_v7 = vld [vmem:[#allocation2 + $0x58] sm:$0xff] }
 0x10f   : > { %v1104_v3 = vld [vmem:[%s1178_s2] ss:$0 sm:$0xff]  ;;  %v548_v8 = vld [vmem:[#allocation2 + $0x18] sm:$0xff]  ;;  %v551_v13 = vld [vmem:[#allocation2 + $0x8] sm:$0xff] }
 0x110   : > { %v568_v4 = vmul.f32 %v1104_v3, %v545_v1  ;;  %v569_v5 = vmul.f32 %v1104_v3, %v546_v2  ;;  %v1111_v6 = vld [vmem:[%s1179_s3] ss:$0 sm:$0xff]  ;;  %v570_v9 = vmul.f32 %v1104_v3, %v547_v7  ;;  %v571_v10 = vmul.f32 %v1104_v3, %v548_v8  ;;  %v549_v11 = vld [vmem:[#allocation2 + $0x50] sm:$0xff]  ;;  %v556_v34 = vld [vmem:[#allocation2 + $0x38] sm:$0xff] }
 0x111   : > { %v572_v16 = vmul.f32 %v1104_v3, %v549_v11  ;;  %v574_v21 = vmul.f32 %v1104_v3, %v551_v13  ;;  %v553_v23 = vld [vmem:[#allocation2 + $0x40] sm:$0xff]  ;;  %v555_v33 = vld [vmem:[#allocation2 + $0x10] sm:$0xff]  ;;  %v559_v45 = vld [vmem:[#allocation2 + $0x78] sm:$0xff]  ;;  %v579_v49 = vmul.f32 %v1104_v3, %v556_v34 }
 0x112   : > { %v591_v14 = vadd.f32 %v1111_v6, %v568_v4  ;;  %v592_v15 = vadd.f32 %v1111_v6, %v569_v5  ;;  %v552_v18 = vld [vmem:[#allocation2 + $0x48] sm:$0xff]  ;;  %v593_v19 = vadd.f32 %v1111_v6, %v570_v9  ;;  %v594_v20 = vadd.f32 %v1111_v6, %v571_v10  ;;  %v554_v28 = vld [vmem:[#allocation2 + $0x20] sm:$0xff] }
 0x113   : > { %v575_v22 = vmul.f32 %v1104_v3, %v552_v18  ;;  %v595_v26 = vadd.f32 %v1111_v6, %v572_v16  ;;  %v597_v31 = vadd.f32 %v1111_v6, %v574_v21  ;;  %v576_v38 = vmul.f32 %v1104_v3, %v553_v23  ;;  %v557_v39 = vld [vmem:[#allocation2 + $0x60] sm:$0xff]  ;;  %v560_v50 = vld [vmem:[#allocation2 + $0x28] sm:$0xff] }
 0x114   : > { %v550_v12 = vld [vmem:[#allocation2 + $0x68] sm:$0xff]  ;;  %v607_v24 = vmax.f32 %v591_v14, 0.0  ;;  %v608_v25 = vmax.f32 %v592_v15, 0.0  ;;  %v609_v29 = vmax.f32 %v593_v19, 0.0  ;;  %v610_v30 = vmax.f32 %v594_v20, 0.0  ;;  %v558_v40 = vld [vmem:[#allocation2 + $0x70] sm:$0xff] }
 0x115   : > { %v573_v17 = vmul.f32 %v1104_v3, %v550_v12  ;;  %v598_v32 = vadd.f32 %v1111_v6, %v575_v22  ;;  %v611_v36 = vmax.f32 %v595_v26, 0.0  ;;  %v613_v42 = vmax.f32 %v597_v31, 0.0 }
 0x116   : > { %v852_v35 = vpack.c.bf16 %v608_v25, %v607_v24  ;;  %v857_v41 = vpack.c.bf16 %v610_v30, %v609_v29  ;;  %v577_v44 = vmul.f32 %v1104_v3, %v554_v28  ;;  %v599_v47 = vadd.f32 %v1111_v6, %v576_v38 }
 0x117   : > { %v596_v27 = vadd.f32 %v1111_v6, %v573_v17  ;;  %v614_v43 = vmax.f32 %v598_v32, 0.0  ;;  %v578_v48 = vmul.f32 %v1104_v3, %v555_v33  ;;  %v580_v53 = vmul.f32 %v1104_v3, %v557_v39 }
 0x118   : > { %853 = vst [vmem:[%s1180_s4] sm:$0xff] %v852_v35   ;;  %889 = vst [vmem:[%s1180_s4 + $0x8] sm:$0xff] %v857_v41   ;;  %v600_v52 = vadd.f32 %v1111_v6, %v577_v44  ;;  %v581_v54 = vmul.f32 %v1104_v3, %v558_v40  ;;  %v615_v55 = vmax.f32 %v599_v47, 0.0  ;;  %v602_v57 = vadd.f32 %v1111_v6, %v579_v49 }
 0x119   : > { %v612_v37 = vmax.f32 %v596_v27, 0.0  ;;  %v867_v51 = vpack.c.bf16 %v614_v43, %v613_v42  ;;  %v601_v56 = vadd.f32 %v1111_v6, %v578_v48  ;;  %v582_v58 = vmul.f32 %v1104_v3, %v559_v45 }
 0x11a   : > { %v616_v59 = vmax.f32 %v600_v52, 0.0  ;;  %v603_v60 = vadd.f32 %v1111_v6, %v580_v53  ;;  %v604_v61 = vadd.f32 %v1111_v6, %v581_v54  ;;  %v583_v62 = vmul.f32 %v1104_v3, %v560_v50 }
 0x11b   : > { %v862_v46 = vpack.c.bf16 %v612_v37, %v611_v36  ;;  %891 = vst [vmem:[%s1180_s4 + $0x18] sm:$0xff] %v867_v51   ;;  %v617_v63 = vmax.f32 %v601_v56, 0.0  ;;  %v618_v0 = vmax.f32 %v602_v57, 0.0  ;;  %v605_v1 = vadd.f32 %v1111_v6, %v582_v58 }
 0x11c   : > { %v872_v2 = vpack.c.bf16 %v616_v59, %v615_v55  ;;  %v619_v4 = vmax.f32 %v603_v60, 0.0  ;;  %v620_v5 = vmax.f32 %v604_v61, 0.0  ;;  %v606_v7 = vadd.f32 %v1111_v6, %v583_v62 }
 0x11d   : > { %890 = vst [vmem:[%s1180_s4 + $0x10] sm:$0xff] %v862_v46   ;;  %v877_v8 = vpack.c.bf16 %v618_v0, %v617_v63  ;;  %v621_v9 = vmax.f32 %v605_v1, 0.0 }
 0x11e   : > { %892 = vst [vmem:[%s1180_s4 + $0x20] sm:$0xff] %v872_v2   ;;  %v882_v10 = vpack.c.bf16 %v620_v5, %v619_v4  ;;  %v622_v11 = vmax.f32 %v606_v7, 0.0 }
 0x11f   : > { %893 = vst [vmem:[%s1180_s4 + $0x28] sm:$0xff] %v877_v8  }
 0x120   : > { %894 = vst [vmem:[%s1180_s4 + $0x30] sm:$0xff] %v882_v10   ;;  %v887_v3 = vpack.c.bf16 %v622_v11, %v621_v9 }
 0x122   : > { %895 = vst [vmem:[%s1180_s4 + $0x38] sm:$0xff] %v887_v3  }
 0x123 PF: > { %s14_s17 = sadd.s32 1, %s1023_s17   ;;  %s1181_s15 = smov %s1019_s16 }
 0x124   : > { %p11_p7 = scmp.ge.s32.totalorder %s14_s17, 11   ;;  %s1182_s16 = smov %s1184_s18 }
 0x126   :  { %13 = sbr.rel (!%p11_p7) target bundleno = 2 (0x2), region = 77 }

// kernel: preact_bottleneck_forward.5
= control target key start
LH: loop header
LB: loop body
LE: loop exit
PB: predicated region body
PF: predicated region fallthrough
CT: control target
= control target key end

     0   :  { %s554_s3 = inlined_call_operand.vmem [shape: bf16[128,128], index: 3, kind: input, shape index: {}]   ;;  %s555_s0 = inlined_call_operand.vmem [shape: f32[128,128], index: 0, kind: input, shape index: {}]   ;;  %s556_s1 = inlined_call_operand.vmem [shape: f32[1,128], index: 1, kind: input, shape index: {}]   ;;  %s557_s2 = inlined_call_operand.vmem [shape: f32[1,128], index: 2, kind: input, shape index: {}]   ;;  %s558_s4 = inlined_call_operand.vmem [shape: f32[128,128], index: 4, kind: output, shape index: {}]  }
   0x1   :  { %v359_v0 = vld [vmem:[%s554_s3 + $0x38] sm:$0xff]   ;;  %v360_v1 = vld [vmem:[%s554_s3 + $0x30] sm:$0xff]   ;;  %v361_v2 = vld [vmem:[%s554_s3 + $0x28] sm:$0xff]  }
   0x2   :  { %311 = vmatprep.subr.bf16.mxu0 %v359_v0  ;;  %343 = vmatprep.subr.bf16.mxu1 %v359_v0  ;;  %v362_v3 = vld [vmem:[%s554_s3 + $0x20] sm:$0xff]   ;;  %v19_v5 = vld [vmem:[%s555_s0 + $0x8] sm:$0xff]  ;;  %v363_v16 = vld [vmem:[%s554_s3 + $0x18] sm:$0xff]  }
   0x3   :  { %312 = vmatpush3.bf16.msra.mxu0 %v359_v0  ;;  %351 = vmatpush3.bf16.msra.mxu1 %v359_v0  ;;  %v18_v4 = vld [vmem:[%s555_s0] sm:$0xff]  ;;  %v27_v11 = vld [vmem:[%s555_s0 + $0x48] sm:$0xff]  ;;  %v20_v21 = vld [vmem:[%s555_s0 + $0x10] sm:$0xff] }
   0x4   :  { %313 = vmatprep.subr.bf16.mxu0 %v360_v1  ;;  %344 = vmatprep.subr.bf16.mxu1 %v360_v1  ;;  %v413_v6 = vld [vmem:[%s556_s1] ss:$0 sm:$0xff]  ;;  %v21_v24 = vld [vmem:[%s555_s0 + $0x18] sm:$0xff]  ;;  %v28_v25 = vld [vmem:[%s555_s0 + $0x50] sm:$0xff] }
   0x5   :  { %v41_v7 = vmul.f32 %v413_v6, %v18_v4  ;;  %v42_v8 = vmul.f32 %v413_v6, %v19_v5  ;;  %v420_v9 = vld [vmem:[%s557_s2] ss:$0 sm:$0xff]  ;;  %v50_v13 = vmul.f32 %v413_v6, %v27_v11  ;;  %v29_v26 = vld [vmem:[%s555_s0 + $0x58] sm:$0xff]  ;;  %v364_v27 = vld [vmem:[%s554_s3 + $0x10] sm:$0xff]   ;;  %v43_v34 = vmul.f32 %v413_v6, %v20_v21 }
   0x6   :  { %v26_v10 = vld [vmem:[%s555_s0 + $0x40] sm:$0xff]  ;;  %v23_v31 = vld [vmem:[%s555_s0 + $0x28] sm:$0xff]  ;;  %v44_v35 = vmul.f32 %v413_v6, %v21_v24  ;;  %v51_v36 = vmul.f32 %v413_v6, %v28_v25  ;;  %v52_v37 = vmul.f32 %v413_v6, %v29_v26  ;;  %v24_v48 = vld [vmem:[%s555_s0 + $0x30] sm:$0xff] }
   0x7   :  { %314 = vmatpush3.bf16.msra.mxu0 %v360_v1  ;;  %352 = vmatpush3.bf16.msra.mxu1 %v360_v1  ;;  %v49_v12 = vmul.f32 %v413_v6, %v26_v10  ;;  %v64_v14 = vadd.f32 %v420_v9, %v41_v7  ;;  %v65_v15 = vadd.f32 %v420_v9, %v42_v8  ;;  %v22_v29 = vld [vmem:[%s555_s0 + $0x20] sm:$0xff]  ;;  %v31_v33 = vld [vmem:[%s555_s0 + $0x68] sm:$0xff]  ;;  %v25_v52 = vld [vmem:[%s555_s0 + $0x38] sm:$0xff] }
   0x8   :  { %315 = vmatprep.subr.bf16.mxu0 %v361_v2  ;;  %345 = vmatprep.subr.bf16.mxu1 %v361_v2  ;;  %v73_v18 = vadd.f32 %v420_v9, %v50_v13  ;;  %v30_v32 = vld [vmem:[%s555_s0 + $0x60] sm:$0xff]  ;;  %v45_v38 = vmul.f32 %v413_v6, %v22_v29  ;;  %v46_v39 = vmul.f32 %v413_v6, %v23_v31  ;;  %v365_v42 = vld [vmem:[%s554_s3 + $0x8] sm:$0xff]   ;;  %v32_v53 = vld [vmem:[%s555_s0 + $0x70] sm:$0xff] }
   0x9   :  { %v72_v17 = vadd.f32 %v420_v9, %v49_v12  ;;  %v80_v19 = vmax.f32 %v64_v14, 0.0  ;;  %v81_v20 = vmax.f32 %v65_v15, 0.0  ;;  %v53_v40 = vmul.f32 %v413_v6, %v30_v32  ;;  %v33_v54 = vld [vmem:[%s555_s0 + $0x78] sm:$0xff]  ;;  %v366_v55 = vld [vmem:[%s554_s3] sm:$0xff]  }
   0xa   :  { %v89_v23 = vmax.f32 %v73_v18, 0.0  ;;  %v54_v41 = vmul.f32 %v413_v6, %v31_v33  ;;  %v66_v43 = vadd.f32 %v420_v9, %v43_v34  ;;  %v67_v44 = vadd.f32 %v420_v9, %v44_v35 }
   0xb   :  { %316 = vmatpush3.bf16.msra.mxu0 %v361_v2  ;;  %353 = vmatpush3.bf16.msra.mxu1 %v361_v2  ;;  %v88_v22 = vmax.f32 %v72_v17, 0.0  ;;  %v96_v28 = vpack.c.bf16 %v81_v20, %v80_v19  ;;  %v74_v45 = vadd.f32 %v420_v9, %v51_v36  ;;  %v75_v46 = vadd.f32 %v420_v9, %v52_v37 }
   0xc   :  { %317 = vmatprep.subr.bf16.mxu0 %v362_v3  ;;  %346 = vmatprep.subr.bf16.mxu1 %v362_v3  ;;  %v68_v47 = vadd.f32 %v420_v9, %v45_v38  ;;  %v69_v49 = vadd.f32 %v420_v9, %v46_v39  ;;  %v76_v50 = vadd.f32 %v420_v9, %v53_v40  ;;  %v82_v56 = vmax.f32 %v66_v43, 0.0 }
   0xd   :  { %v100_v30 = vpack.c.bf16 %v89_v23, %v88_v22  ;;  %327 = vmatprep.mubr.bf16.mxu0 %v96_v28  ;;  %v77_v51 = vadd.f32 %v420_v9, %v54_v41  ;;  %v83_v57 = vmax.f32 %v67_v44, 0.0  ;;  %v90_v58 = vmax.f32 %v74_v45, 0.0 }
   0xe   :  { %v91_v59 = vmax.f32 %v75_v46, 0.0  ;;  %v47_v60 = vmul.f32 %v413_v6, %v24_v48  ;;  %v48_v61 = vmul.f32 %v413_v6, %v25_v52  ;;  %v55_v62 = vmul.f32 %v413_v6, %v32_v53 }
   0xf   :  { %318 = vmatpush3.bf16.msra.mxu0 %v362_v3  ;;  %354 = vmatpush3.bf16.msra.mxu1 %v362_v3  ;;  %v56_v63 = vmul.f32 %v413_v6, %v33_v54  ;;  %v84_v0 = vmax.f32 %v68_v47, 0.0  ;;  %v85_v1 = vmax.f32 %v69_v49, 0.0  ;;  %v92_v2 = vmax.f32 %v76_v50, 0.0 }
  0x10   :  { %319 = vmatprep.subr.bf16.mxu0 %v363_v16  ;;  %347 = vmatprep.subr.bf16.mxu1 %v363_v16  ;;  %v93_v3 = vmax.f32 %v77_v51, 0.0  ;;  %v97_v4 = vpack.c.bf16 %v83_v57, %v82_v56  ;;  %v101_v5 = vpack.c.bf16 %v91_v59, %v90_v58  ;;  %v70_v7 = vadd.f32 %v420_v9, %v47_v60 }
  0x11   :  { %335 = vmatprep.mubr.bf16.mxu1 %v100_v30  ;;  %v71_v8 = vadd.f32 %v420_v9, %v48_v61  ;;  %v78_v10 = vadd.f32 %v420_v9, %v55_v62  ;;  %v79_v11 = vadd.f32 %v420_v9, %v56_v63  ;;  %v98_v6 = vpack.c.bf16 %v85_v1, %v84_v0 }
  0x12   :  { %v102_v12 = vpack.c.bf16 %v93_v3, %v92_v2  ;;  %v86_v13 = vmax.f32 %v70_v7, 0.0 }
  0x13   :  { %320 = vmatpush3.bf16.msra.mxu0 %v363_v16  ;;  %355 = vmatpush3.bf16.msra.mxu1 %v363_v16  ;;  %v87_v14 = vmax.f32 %v71_v8, 0.0  ;;  %v94_v15 = vmax.f32 %v78_v10, 0.0  ;;  %v95_v16 = vmax.f32 %v79_v11, 0.0 }
  0x14   :  { %321 = vmatprep.subr.bf16.mxu0 %v364_v27  ;;  %348 = vmatprep.subr.bf16.mxu1 %v364_v27 }
  0x15   :  { %v99_v17 = vpack.c.bf16 %v87_v14, %v86_v13  ;;  %v103_v18 = vpack.c.bf16 %v95_v16, %v94_v15 }
  0x17   :  { %322 = vmatpush3.bf16.msra.mxu0 %v364_v27  ;;  %356 = vmatpush3.bf16.msra.mxu1 %v364_v27 }
  0x18   :  { %323 = vmatprep.subr.bf16.mxu0 %v365_v42  ;;  %349 = vmatprep.subr.bf16.mxu1 %v365_v42 }
  0x1b   :  { %324 = vmatpush3.bf16.msra.mxu0 %v365_v42  ;;  %357 = vmatpush3.bf16.msra.mxu1 %v365_v42 }
  0x1c   :  { %325 = vmatprep.subr.bf16.mxu0 %v366_v55  ;;  %350 = vmatprep.subr.bf16.mxu1 %v366_v55 }
  0x1f   :  { %326 = vmatpush3.bf16.msra.mxu0 %v366_v55  ;;  %358 = vmatpush3.bf16.msra.mxu1 %v366_v55 }
  0x22   :  { %328 = vmatmul.mubr.bf16.vlgmr.msra.gmra.mxu0 %v97_v4  ;;  %336 = vmatmul.mubr.bf16.vlgmr.msra.gmra.mxu1 %v101_v5 }
  0x23   :  { %331 = vmatprep.mubr.bf16.mxu0 %v98_v6  ;;  %339 = vmatprep.mubr.bf16.mxu1 %v102_v12 }
  0x2a   :  { %332 = vmatmul.mubr.bf16.gmra.mxu0 %v99_v17  ;;  %340 = vmatmul.mubr.bf16.gmra.mxu1 %v103_v18 }
  0xe2   :  { %v329_v19 = vpop.f32.mrf.mxu0  ;;  %v337_v20 = vpop.f32.mrf.mxu1 }
  0xe3   :  { %267 = vst [vmem:[%s558_s4 + $0x10] sm:$0xff] %v329_v19  ;;  %275 = vst [vmem:[%s558_s4 + $0x50] sm:$0xff] %v337_v20 }
  0xe4   :  { %v202_v9 = vpop.f32.mrf.mxu0  ;;  %v234_v21 = vpop.f32.mrf.mxu1 }
  0xe5   :  { %265 = vst [vmem:[%s558_s4] sm:$0xff] %v202_v9  ;;  %273 = vst [vmem:[%s558_s4 + $0x40] sm:$0xff] %v234_v21 }
  0xe6   :  { %v330_v22 = vpop.f32.mrf.mxu0  ;;  %v338_v23 = vpop.f32.mrf.mxu1 }
  0xe7   :  { %268 = vst [vmem:[%s558_s4 + $0x18] sm:$0xff] %v330_v22  ;;  %276 = vst [vmem:[%s558_s4 + $0x58] sm:$0xff] %v338_v23 }
  0xe8   :  { %v205_v24 = vpop.f32.mrf.mxu0  ;;  %v237_v25 = vpop.f32.mrf.mxu1 }
  0xe9   :  { %266 = vst [vmem:[%s558_s4 + $0x8] sm:$0xff] %v205_v24  ;;  %274 = vst [vmem:[%s558_s4 + $0x48] sm:$0xff] %v237_v25 }
  0xea   :  { %v333_v26 = vpop.f32.mrf.mxu0  ;;  %v341_v27 = vpop.f32.mrf.mxu1 }
  0xeb   :  { %271 = vst [vmem:[%s558_s4 + $0x30] sm:$0xff] %v333_v26  ;;  %279 = vst [vmem:[%s558_s4 + $0x70] sm:$0xff] %v341_v27 }
  0xec   :  { %v218_v28 = vpop.f32.mrf.mxu0  ;;  %v250_v29 = vpop.f32.mrf.mxu1 }
  0xed   :  { %269 = vst [vmem:[%s558_s4 + $0x20] sm:$0xff] %v218_v28  ;;  %277 = vst [vmem:[%s558_s4 + $0x60] sm:$0xff] %v250_v29 }
  0xee   :  { %v334_v30 = vpop.f32.mrf.mxu0  ;;  %v342_v31 = vpop.f32.mrf.mxu1 }
  0xef   :  { %272 = vst [vmem:[%s558_s4 + $0x38] sm:$0xff] %v334_v30  ;;  %280 = vst [vmem:[%s558_s4 + $0x78] sm:$0xff] %v342_v31 }
  0xf0   :  { %v221_v32 = vpop.f32.mrf.mxu0  ;;  %v253_v33 = vpop.f32.mrf.mxu1 }
  0xf1   :  { %270 = vst [vmem:[%s558_s4 + $0x28] sm:$0xff] %v221_v32  ;;  %278 = vst [vmem:[%s558_s4 + $0x68] sm:$0xff] %v253_v33 }

// kernel: preact_bottleneck_forward.7
= control target key start
LH: loop header
LB: loop body
LE: loop exit
PB: predicated region body
PF: predicated region fallthrough
CT: control target
= control target key end

     0   :  { %s536_s1 = inlined_call_operand.vmem [shape: bf16[128,128], index: 1, kind: input, shape index: {}]   ;;  %s537_s0 = inlined_call_operand.vmem [shape: bf16[128,128], index: 0, kind: input, shape index: {}]   ;;  %s538_s2 = inlined_call_operand.vmem [shape: f32[128,128], index: 2, kind: input, shape index: {}, may-alias: {2,3}]   ;;  %s539_s3 = inlined_call_operand.vmem [shape: f32[128,128], index: 3, kind: output, shape index: {}, may-alias: {2,3}]  }
   0x1   :  { %v356_v0 = vld [vmem:[%s536_s1 + $0x38] sm:$0xff]   ;;  %v357_v1 = vld [vmem:[%s536_s1 + $0x30] sm:$0xff]   ;;  %v358_v2 = vld [vmem:[%s536_s1 + $0x28] sm:$0xff]  }
   0x2   :  { %308 = vmatprep.subr.bf16.mxu0 %v356_v0  ;;  %340 = vmatprep.subr.bf16.mxu1 %v356_v0  ;;  %v359_v3 = vld [vmem:[%s536_s1 + $0x20] sm:$0xff]   ;;  %v360_v6 = vld [vmem:[%s536_s1 + $0x18] sm:$0xff]   ;;  %v361_v7 = vld [vmem:[%s536_s1 + $0x10] sm:$0xff]  }
   0x3   :  { %309 = vmatpush3.bf16.msra.mxu0 %v356_v0  ;;  %348 = vmatpush3.bf16.msra.mxu1 %v356_v0  ;;  %v364_v4 = vld [vmem:[%s537_s0] sm:$0xff]   ;;  %v362_v8 = vld [vmem:[%s536_s1 + $0x8] sm:$0xff]   ;;  %v368_v12 = vld [vmem:[%s537_s0 + $0x10] sm:$0xff]  }
   0x4   :  { %310 = vmatprep.subr.bf16.mxu0 %v357_v1  ;;  %341 = vmatprep.subr.bf16.mxu1 %v357_v1  ;;  %v365_v5 = vld [vmem:[%s537_s0 + $0x20] sm:$0xff]   ;;  %v366_v10 = vld [vmem:[%s537_s0 + $0x8] sm:$0xff]   ;;  %v369_v13 = vld [vmem:[%s537_s0 + $0x30] sm:$0xff]  }
   0x5   :  { %324 = vmatprep.mubr.bf16.mxu0 %v364_v4  ;;  %332 = vmatprep.mubr.bf16.mxu1 %v365_v5  ;;  %v363_v9 = vld [vmem:[%s536_s1] sm:$0xff]   ;;  %v367_v11 = vld [vmem:[%s537_s0 + $0x28] sm:$0xff]   ;;  %v370_v14 = vld [vmem:[%s537_s0 + $0x18] sm:$0xff]  }
   0x6   :  { %v371_v15 = vld [vmem:[%s537_s0 + $0x38] sm:$0xff]   ;;  %v49_v16 = vld [vmem:[%s538_s2 + $0x10] sm:$0xff]  ;;  %v47_v20 = vld [vmem:[%s538_s2] sm:$0xff] }
   0x7   :  { %311 = vmatpush3.bf16.msra.mxu0 %v357_v1  ;;  %349 = vmatpush3.bf16.msra.mxu1 %v357_v1  ;;  %v57_v17 = vld [vmem:[%s538_s2 + $0x50] sm:$0xff]  ;;  %v55_v21 = vld [vmem:[%s538_s2 + $0x40] sm:$0xff]  ;;  %v50_v26 = vld [vmem:[%s538_s2 + $0x18] sm:$0xff] }
   0x8   :  { %312 = vmatprep.subr.bf16.mxu0 %v358_v2  ;;  %342 = vmatprep.subr.bf16.mxu1 %v358_v2  ;;  %v58_v27 = vld [vmem:[%s538_s2 + $0x58] sm:$0xff] }
   0xb   :  { %313 = vmatpush3.bf16.msra.mxu0 %v358_v2  ;;  %350 = vmatpush3.bf16.msra.mxu1 %v358_v2 }
   0xc   :  { %314 = vmatprep.subr.bf16.mxu0 %v359_v3  ;;  %343 = vmatprep.subr.bf16.mxu1 %v359_v3 }
   0xf   :  { %315 = vmatpush3.bf16.msra.mxu0 %v359_v3  ;;  %351 = vmatpush3.bf16.msra.mxu1 %v359_v3 }
  0x10   :  { %316 = vmatprep.subr.bf16.mxu0 %v360_v6  ;;  %344 = vmatprep.subr.bf16.mxu1 %v360_v6 }
  0x13   :  { %317 = vmatpush3.bf16.msra.mxu0 %v360_v6  ;;  %352 = vmatpush3.bf16.msra.mxu1 %v360_v6 }
  0x14   :  { %318 = vmatprep.subr.bf16.mxu0 %v361_v7  ;;  %345 = vmatprep.subr.bf16.mxu1 %v361_v7 }
  0x17   :  { %319 = vmatpush3.bf16.msra.mxu0 %v361_v7  ;;  %353 = vmatpush3.bf16.msra.mxu1 %v361_v7 }
  0x18   :  { %320 = vmatprep.subr.bf16.mxu0 %v362_v8  ;;  %346 = vmatprep.subr.bf16.mxu1 %v362_v8 }
  0x1b   :  { %321 = vmatpush3.bf16.msra.mxu0 %v362_v8  ;;  %354 = vmatpush3.bf16.msra.mxu1 %v362_v8 }
  0x1c   :  { %322 = vmatprep.subr.bf16.mxu0 %v363_v9  ;;  %347 = vmatprep.subr.bf16.mxu1 %v363_v9 }
  0x1f   :  { %323 = vmatpush3.bf16.msra.mxu0 %v363_v9  ;;  %355 = vmatpush3.bf16.msra.mxu1 %v363_v9 }
  0x22   :  { %325 = vmatmul.mubr.bf16.vlgmr.msra.gmra.mxu0 %v366_v10  ;;  %333 = vmatmul.mubr.bf16.vlgmr.msra.gmra.mxu1 %v367_v11 }
  0x23   :  { %328 = vmatprep.mubr.bf16.mxu0 %v368_v12  ;;  %336 = vmatprep.mubr.bf16.mxu1 %v369_v13 }
  0x2a   :  { %329 = vmatmul.mubr.bf16.gmra.mxu0 %v370_v14  ;;  %337 = vmatmul.mubr.bf16.gmra.mxu1 %v371_v15 }
  0xe2   :  { %v326_v18 = vpop.f32.mrf.mxu0  ;;  %v334_v19 = vpop.f32.mrf.mxu1 }
  0xe3   :  { %v202_v22 = vadd.f32 %v326_v18, %v49_v16  ;;  %v234_v23 = vadd.f32 %v334_v19, %v57_v17 }
  0xe4   :  { %v193_v24 = vpop.f32.mrf.mxu0  ;;  %v225_v25 = vpop.f32.mrf.mxu1 }
  0xe5   :  { %258 = vst [vmem:[%s539_s3 + $0x10] sm:$0xff] %v202_v22  ;;  %266 = vst [vmem:[%s539_s3 + $0x50] sm:$0xff] %v234_v23  ;;  %v194_v28 = vadd.f32 %v193_v24, %v47_v20  ;;  %v226_v29 = vadd.f32 %v225_v25, %v55_v21 }
  0xe6   :  { %v327_v30 = vpop.f32.mrf.mxu0  ;;  %v335_v31 = vpop.f32.mrf.mxu1 }
  0xe7   :  { %v205_v34 = vadd.f32 %v327_v30, %v50_v26  ;;  %v237_v35 = vadd.f32 %v335_v31, %v58_v27 }
  0xe8   :  { %v196_v36 = vpop.f32.mrf.mxu0  ;;  %v228_v37 = vpop.f32.mrf.mxu1 }
  0xea   :  { %v330_v42 = vpop.f32.mrf.mxu0  ;;  %v338_v43 = vpop.f32.mrf.mxu1 }
  0xec   :  { %v48_v32 = vld [vmem:[%s538_s2 + $0x8] sm:$0xff]  ;;  %v209_v48 = vpop.f32.mrf.mxu0  ;;  %v241_v49 = vpop.f32.mrf.mxu1 }
  0xed   :  { %v56_v33 = vld [vmem:[%s538_s2 + $0x48] sm:$0xff]  ;;  %v197_v40 = vadd.f32 %v196_v36, %v48_v32 }
  0xee   :  { %256 = vst [vmem:[%s539_s3] sm:$0xff] %v194_v28  ;;  %264 = vst [vmem:[%s539_s3 + $0x40] sm:$0xff] %v226_v29  ;;  %v229_v41 = vadd.f32 %v228_v37, %v56_v33  ;;  %v331_v54 = vpop.f32.mrf.mxu0  ;;  %v339_v55 = vpop.f32.mrf.mxu1 }
  0xf0   :  { %v212_v60 = vpop.f32.mrf.mxu0  ;;  %v244_v61 = vpop.f32.mrf.mxu1 }
  0xf5   :  { %v53_v38 = vld [vmem:[%s538_s2 + $0x30] sm:$0xff] }
  0xf6   :  { %v61_v39 = vld [vmem:[%s538_s2 + $0x70] sm:$0xff]  ;;  %v218_v46 = vadd.f32 %v330_v42, %v53_v38 }
  0xf7   :  { %259 = vst [vmem:[%s539_s3 + $0x18] sm:$0xff] %v205_v34  ;;  %267 = vst [vmem:[%s539_s3 + $0x58] sm:$0xff] %v237_v35  ;;  %v250_v47 = vadd.f32 %v338_v43, %v61_v39 }
  0xfe   :  { %v51_v44 = vld [vmem:[%s538_s2 + $0x20] sm:$0xff] }
  0xff   :  { %v59_v45 = vld [vmem:[%s538_s2 + $0x60] sm:$0xff]  ;;  %v210_v52 = vadd.f32 %v209_v48, %v51_v44 }
 0x100   :  { %257 = vst [vmem:[%s539_s3 + $0x8] sm:$0xff] %v197_v40  ;;  %265 = vst [vmem:[%s539_s3 + $0x48] sm:$0xff] %v229_v41  ;;  %v242_v53 = vadd.f32 %v241_v49, %v59_v45 }
 0x107   :  { %v54_v50 = vld [vmem:[%s538_s2 + $0x38] sm:$0xff] }
 0x108   :  { %v62_v51 = vld [vmem:[%s538_s2 + $0x78] sm:$0xff]  ;;  %v221_v58 = vadd.f32 %v331_v54, %v54_v50 }
 0x109   :  { %262 = vst [vmem:[%s539_s3 + $0x30] sm:$0xff] %v218_v46  ;;  %270 = vst [vmem:[%s539_s3 + $0x70] sm:$0xff] %v250_v47  ;;  %v253_v59 = vadd.f32 %v339_v55, %v62_v51 }
 0x110   :  { %v52_v56 = vld [vmem:[%s538_s2 + $0x28] sm:$0xff] }
 0x111   :  { %v60_v57 = vld [vmem:[%s538_s2 + $0x68] sm:$0xff]  ;;  %v213_v62 = vadd.f32 %v212_v60, %v52_v56 }
 0x112   :  { %260 = vst [vmem:[%s539_s3 + $0x20] sm:$0xff] %v210_v52  ;;  %268 = vst [vmem:[%s539_s3 + $0x60] sm:$0xff] %v242_v53  ;;  %v245_v63 = vadd.f32 %v244_v61, %v60_v57 }
 0x113   :  { %263 = vst [vmem:[%s539_s3 + $0x38] sm:$0xff] %v221_v58  ;;  %271 = vst [vmem:[%s539_s3 + $0x78] sm:$0xff] %v253_v59 }
 0x114   :  { %261 = vst [vmem:[%s539_s3 + $0x28] sm:$0xff] %v213_v62  ;;  %269 = vst [vmem:[%s539_s3 + $0x68] sm:$0xff] %v245_v63 }

</bundles_post_ra>
